<compile_context>
chip_gen: v5e
topology: v5e:2x2
jax: 0.10.0
libtpu: 0.0.40
codegen_flags: <defaults>
</compile_context>

<pallas_src>
import jax
import jax.numpy as jnp
from jax import lax
from jax.experimental import pallas as pl
from jax.experimental.pallas import tpu as pltpu


def _bilstm_kernel(x_ref, wih_f_ref, wih_b_ref, whh_f_ref, whh_b_ref,
                   b_f_ref, b_b_ref, wlf_ref, wlb_ref, blin_ref,
                   out_ref,
                   gx_f_ref, gx_b_ref, hf_ref, hb_ref):
    T, B, I = x_ref.shape
    H = whh_f_ref.shape[0]
    O_pad = out_ref.shape[2]

    # ---- Prologue: hoisted input projection (one MXU-friendly matmul per direction,
    # ---- bias folded in). Removes 2*T tiny matmuls + per-step bias broadcasts from
    # ---- the serial critical path.
    x2d = x_ref[...].reshape(T * B, I)
    gx_f_ref[...] = (jnp.dot(x2d, wih_f_ref[...], preferred_element_type=jnp.float32)
                     + b_f_ref[...]).reshape(T, B, 4 * H)
    gx_b_ref[...] = (jnp.dot(x2d, wih_b_ref[...], preferred_element_type=jnp.float32)
                     + b_b_ref[...]).reshape(T, B, 4 * H)

    # Hoist weight loads out of the loop.
    whh_f = whh_f_ref[...]
    whh_b = whh_b_ref[...]

    def cell(gx_t, h, c, whh):
        # PyTorch LSTM cell, gate order (i, f, g, o); x-projection + bias already in gx_t.
        gates = gx_t + jnp.dot(h, whh, preferred_element_type=jnp.float32)   # [B, 4H]
        i_g = jax.nn.sigmoid(gates[:, 0:H])
        f_g = jax.nn.sigmoid(gates[:, H:2 * H])
        g_g = jnp.tanh(gates[:, 2 * H:3 * H])
        o_g = jax.nn.sigmoid(gates[:, 3 * H:4 * H])
        c_new = f_g * c + i_g * g_g
        h_new = o_g * jnp.tanh(c_new)
        return h_new, c_new

    # ---- Interleaved fwd/bwd recurrence in a single unrolled loop; h/c carried as values.
    def body(t, carry):
        h_f, c_f, h_b, c_b = carry
        tb = T - 1 - t
        h_f, c_f = cell(gx_f_ref[t], h_f, c_f, whh_f)
        h_b, c_b = cell(gx_b_ref[tb], h_b, c_b, whh_b)
        hf_ref[t] = h_f
        hb_ref[tb] = h_b
        return (h_f, c_f, h_b, c_b)

    z = jnp.zeros((B, H), jnp.float32)
    lax.fori_loop(0, T, body, (z, z, z, z), unroll=True)

    # ---- Epilogue: final Linear over concat(h_fwd, h_bwd) in split-weight form,
    # ---- as two 2-D matmuls over [T*B, H]; O is lane-padded so the store is unmasked.
    hf2 = hf_ref[...].reshape(T * B, H)
    hb2 = hb_ref[...].reshape(T * B, H)
    out2 = (jnp.dot(hf2, wlf_ref[...], preferred_element_type=jnp.float32)
            + jnp.dot(hb2, wlb_ref[...], preferred_element_type=jnp.float32)
            + blin_ref[...])                                                 # [T*B, O_pad]
    out_ref[...] = out2.reshape(T, B, O_pad).astype(out_ref.dtype)


def _fullspec(shape):
    if len(shape) == 2:
        return pl.BlockSpec(shape, lambda i: (0, 0))
    return pl.BlockSpec(shape, lambda i: (0, 0, 0))


def bidirectional_lstm_pallas(x, p):
    """x: [B, T, input_size] float32 -> [B, T, output_size] float32."""
    B, T, I = x.shape
    H = p["w_hh_f"].shape[1]
    O = p["w_lin"].shape[0]
    O_pad = ((O + 127) // 128) * 128          # lane-dense output stores

    x_tb = jnp.transpose(x, (1, 0, 2)).astype(jnp.float32)      # [T, B, I] (time-major)

    # Pre-transpose weights so the kernel does x @ W / h @ W (glue, not compute).
    wih_f = p["w_ih_f"].T.astype(jnp.float32)                   # [I, 4H]
    wih_b = p["w_ih_b"].T.astype(jnp.float32)
    whh_f = p["w_hh_f"].T.astype(jnp.float32)                   # [H, 4H]
    whh_b = p["w_hh_b"].T.astype(jnp.float32)
    b_f = (p["b_ih_f"] + p["b_hh_f"]).reshape(1, 4 * H).astype(jnp.float32)
    b_b = (p["b_ih_b"] + p["b_hh_b"]).reshape(1, 4 * H).astype(jnp.float32)
    wl = p["w_lin"].T.astype(jnp.float32)                       # [2H, O]
    wlf = jnp.pad(wl[0:H, :], ((0, 0), (0, O_pad - O)))         # [H, O_pad]
    wlb = jnp.pad(wl[H:2 * H, :], ((0, 0), (0, O_pad - O)))     # [H, O_pad]
    blin = jnp.pad(p["b_lin"].reshape(1, O).astype(jnp.float32),
                   ((0, 0), (0, O_pad - O)))                    # [1, O_pad]

    inputs = (x_tb, wih_f, wih_b, whh_f, whh_b, b_f, b_b, wlf, wlb, blin)

    # Scoped-VMEM budget sized to the actual resident footprint (+ headroom).
    in_bytes = sum(int(a.size) * a.dtype.itemsize for a in inputs)
    out_bytes = T * B * O_pad * 4
    scratch_bytes = (2 * T * B * 4 * H + 2 * T * B * H) * 4
    vmem_limit = min(max(2 * (in_bytes + out_bytes) + scratch_bytes + (4 << 20),
                         8 << 20), 100 << 20)

    out_tb = pl.pallas_call(
        _bilstm_kernel,
        out_shape=jax.ShapeDtypeStruct((T, B, O_pad), jnp.float32),
        grid=(1,),
        in_specs=[_fullspec(a.shape) for a in inputs],
        out_specs=pl.BlockSpec((T, B, O_pad), lambda i: (0, 0, 0)),
        scratch_shapes=[
            pltpu.VMEM((T, B, 4 * H), jnp.float32),   # fwd x-projection (+bias)
            pltpu.VMEM((T, B, 4 * H), jnp.float32),   # bwd x-projection (+bias)
            pltpu.VMEM((T, B, H), jnp.float32),       # fwd hidden states
            pltpu.VMEM((T, B, H), jnp.float32),       # bwd hidden states
        ],
        compiler_params=pltpu.CompilerParams(
            dimension_semantics=("arbitrary",),
            vmem_limit_bytes=int(vmem_limit)),
    )(*inputs)

    return jnp.transpose(out_tb, (1, 0, 2))[:, :, :O]           # [B, T, O]


# ----------------- deterministic parameter init (PyTorch-style shapes) -----------------
def make_params(key, input_size, hidden_size, output_size):
    H, I, O = hidden_size, input_size, output_size
    ks = jax.random.split(key, 10)
    s = float(H) ** -0.5

    def u(k, shape):
        return jax.random.uniform(k, shape, jnp.float32, -s, s)

    return {
        "w_ih_f": u(ks[0], (4 * H, I)),
        "w_hh_f": u(ks[1], (4 * H, H)),
        "b_ih_f": u(ks[2], (4 * H,)),
        "b_hh_f": u(ks[3], (4 * H,)),
        "w_ih_b": u(ks[4], (4 * H, I)),
        "w_hh_b": u(ks[5], (4 * H, H)),
        "b_ih_b": u(ks[6], (4 * H,)),
        "b_hh_b": u(ks[7], (4 * H,)),
        "w_lin": u(ks[8], (O, 2 * H)),
        "b_lin": u(ks[9], (O,)),
    }


# ----------------- pure-JAX reference (matches PyTorch LSTM semantics) -----------------
def _lstm_dir_ref(x, w_ih, w_hh, b_ih, b_hh):
    B, T, _ = x.shape
    H = w_hh.shape[1]
    wih_t, whh_t = w_ih.T, w_hh.T
    b = (b_ih + b_hh)[None, :]

    def step(carry, x_t):
        h, c = carry
        g = x_t @ wih_t + h @ whh_t + b
        i = jax.nn.sigmoid(g[:, 0:H])
        f = jax.nn.sigmoid(g[:, H:2 * H])
        gg = jnp.tanh(g[:, 2 * H:3 * H])
        o = jax.nn.sigmoid(g[:, 3 * H:4 * H])
        c = f * c + i * gg
        h = o * jnp.tanh(c)
        return (h, c), h

    init = (jnp.zeros((B, H), jnp.float32), jnp.zeros((B, H), jnp.float32))
    _, hs = jax.lax.scan(step, init, jnp.transpose(x, (1, 0, 2)))
    return jnp.transpose(hs, (1, 0, 2))


def bidirectional_lstm_ref(x, p):
    hf = _lstm_dir_ref(x, p["w_ih_f"], p["w_hh_f"], p["b_ih_f"], p["b_hh_f"])
    hb = _lstm_dir_ref(x[:, ::-1], p["w_ih_b"], p["w_hh_b"],
                       p["b_ih_b"], p["b_hh_b"])[:, ::-1]
    hcat = jnp.concatenate([hf, hb], axis=-1)
    return hcat @ p["w_lin"].T + p["b_lin"][None, None, :]


if __name__ == "__main__":
    key = jax.random.PRNGKey(0)
    B, T, I, H, O = 2, 8, 32, 32, 16
    kx, kp = jax.random.split(key)
    x = jax.random.normal(kx, (B, T, I), jnp.float32)
    params = make_params(kp, I, H, O)

    out = jax.jit(bidirectional_lstm_pallas)(x, params)
    out = jax.block_until_ready(out)

    ref = bidirectional_lstm_ref(x, params)
    assert out.shape == (B, T, O), out.shape
    assert jnp.allclose(out, ref, atol=1e-4, rtol=1e-4), float(jnp.max(jnp.abs(out - ref)))
    print("KERNEL_OK")
</pallas_src>

<mosaic_0001>
module attributes {stable_mosaic.version = 11 : i64} {
  func.func @_bilstm_kernel(%arg0: i32, %arg1: memref<8x2x32xf32, #tpu.memory_space<vmem>>, %arg2: memref<32x128xf32, #tpu.memory_space<vmem>>, %arg3: memref<32x128xf32, #tpu.memory_space<vmem>>, %arg4: memref<32x128xf32, #tpu.memory_space<vmem>>, %arg5: memref<32x128xf32, #tpu.memory_space<vmem>>, %arg6: memref<1x128xf32, #tpu.memory_space<vmem>>, %arg7: memref<1x128xf32, #tpu.memory_space<vmem>>, %arg8: memref<32x128xf32, #tpu.memory_space<vmem>>, %arg9: memref<32x128xf32, #tpu.memory_space<vmem>>, %arg10: memref<1x128xf32, #tpu.memory_space<vmem>>, %arg11: memref<8x2x128xf32, #tpu.memory_space<vmem>>, %arg12: memref<8x2x128xf32, #tpu.memory_space<vmem>>, %arg13: memref<8x2x128xf32, #tpu.memory_space<vmem>>, %arg14: memref<8x2x32xf32, #tpu.memory_space<vmem>>, %arg15: memref<8x2x32xf32, #tpu.memory_space<vmem>>) attributes {dimension_semantics = [#tpu.dimension_semantics<arbitrary>], iteration_bounds = array<i64: 1>, scalar_prefetch = 0 : i64, scratch_operands = 4 : i64, tpu.core_type = #tpu.core_type<tc>, window_params = [{pipeline_mode = #tpu.pipeline_mode<synchronous>, transform_indices = @transform_0, window_bounds = array<i64: 8, 2, 32>}, {pipeline_mode = #tpu.pipeline_mode<synchronous>, transform_indices = @transform_1, window_bounds = array<i64: 32, 128>}, {pipeline_mode = #tpu.pipeline_mode<synchronous>, transform_indices = @transform_2, window_bounds = array<i64: 32, 128>}, {pipeline_mode = #tpu.pipeline_mode<synchronous>, transform_indices = @transform_3, window_bounds = array<i64: 32, 128>}, {pipeline_mode = #tpu.pipeline_mode<synchronous>, transform_indices = @transform_4, window_bounds = array<i64: 32, 128>}, {pipeline_mode = #tpu.pipeline_mode<synchronous>, transform_indices = @transform_5, window_bounds = array<i64: 1, 128>}, {pipeline_mode = #tpu.pipeline_mode<synchronous>, transform_indices = @transform_6, window_bounds = array<i64: 1, 128>}, {pipeline_mode = #tpu.pipeline_mode<synchronous>, transform_indices = @transform_7, window_bounds = array<i64: 32, 128>}, {pipeline_mode = #tpu.pipeline_mode<synchronous>, transform_indices = @transform_8, window_bounds = array<i64: 32, 128>}, {pipeline_mode = #tpu.pipeline_mode<synchronous>, transform_indices = @transform_9, window_bounds = array<i64: 1, 128>}, {pipeline_mode = #tpu.pipeline_mode<synchronous>, transform_indices = @transform_10, window_bounds = array<i64: 8, 2, 128>}]} {
    %c0 = arith.constant 0 : index
    %c0_0 = arith.constant 0 : index
    %c0_1 = arith.constant 0 : index
    %0 = vector.load %arg1[%c0, %c0_0, %c0_1] : memref<8x2x32xf32, #tpu.memory_space<vmem>>, vector<8x2x32xf32>
    %1 = vector.shape_cast %0 : vector<8x2x32xf32> to vector<16x32xf32>
    %c0_2 = arith.constant 0 : index
    %c0_3 = arith.constant 0 : index
    %2 = vector.load %arg2[%c0_2, %c0_3] : memref<32x128xf32, #tpu.memory_space<vmem>>, vector<32x128xf32>
    %cst = arith.constant dense<0.000000e+00> : vector<16x128xf32>
    %3 = tpu.matmul %1, %2, %cst {dimension_numbers = #tpu.dot_dimension_numbers<[1], [0], [0], [1], [0, 0, 1, 1], [], []>} : vector<16x32xf32>, vector<32x128xf32>, vector<16x128xf32> -> vector<16x128xf32>
    %c0_4 = arith.constant 0 : index
    %c0_5 = arith.constant 0 : index
    %4 = vector.load %arg6[%c0_4, %c0_5] : memref<1x128xf32, #tpu.memory_space<vmem>>, vector<1x128xf32>
    %5 = vector.broadcast %4 : vector<1x128xf32> to vector<16x128xf32>
    %6 = arith.addf %3, %5 : vector<16x128xf32>
    %7 = vector.shape_cast %6 : vector<16x128xf32> to vector<8x2x128xf32>
    %c0_6 = arith.constant 0 : index
    %c0_7 = arith.constant 0 : index
    %c0_8 = arith.constant 0 : index
    %8 = vector.load %arg12[%c0_6, %c0_7, %c0_8] : memref<8x2x128xf32, #tpu.memory_space<vmem>>, vector<8x2x128xf32>
    tpu.vector_store %arg12[%c0_6, %c0_7, %c0_8], %7 {strides = array<i32>} : memref<8x2x128xf32, #tpu.memory_space<vmem>>, vector<8x2x128xf32>,
    %c0_9 = arith.constant 0 : index
    %c0_10 = arith.constant 0 : index
    %9 = vector.load %arg3[%c0_9, %c0_10] : memref<32x128xf32, #tpu.memory_space<vmem>>, vector<32x128xf32>
    %cst_11 = arith.constant dense<0.000000e+00> : vector<16x128xf32>
    %10 = tpu.matmul %1, %9, %cst_11 {dimension_numbers = #tpu.dot_dimension_numbers<[1], [0], [0], [1], [0, 0, 1, 1], [], []>} : vector<16x32xf32>, vector<32x128xf32>, vector<16x128xf32> -> vector<16x128xf32>
    %c0_12 = arith.constant 0 : index
    %c0_13 = arith.constant 0 : index
    %11 = vector.load %arg7[%c0_12, %c0_13] : memref<1x128xf32, #tpu.memory_space<vmem>>, vector<1x128xf32>
    %12 = vector.broadcast %11 : vector<1x128xf32> to vector<16x128xf32>
    %13 = arith.addf %10, %12 : vector<16x128xf32>
    %14 = vector.shape_cast %13 : vector<16x128xf32> to vector<8x2x128xf32>
    %c0_14 = arith.constant 0 : index
    %c0_15 = arith.constant 0 : index
    %c0_16 = arith.constant 0 : index
    %15 = vector.load %arg13[%c0_14, %c0_15, %c0_16] : memref<8x2x128xf32, #tpu.memory_space<vmem>>, vector<8x2x128xf32>
    tpu.vector_store %arg13[%c0_14, %c0_15, %c0_16], %14 {strides = array<i32>} : memref<8x2x128xf32, #tpu.memory_space<vmem>>, vector<8x2x128xf32>,
    %c0_17 = arith.constant 0 : index
    %c0_18 = arith.constant 0 : index
    %16 = vector.load %arg4[%c0_17, %c0_18] : memref<32x128xf32, #tpu.memory_space<vmem>>, vector<32x128xf32>
    %c0_19 = arith.constant 0 : index
    %c0_20 = arith.constant 0 : index
    %17 = vector.load %arg5[%c0_19, %c0_20] : memref<32x128xf32, #tpu.memory_space<vmem>>, vector<32x128xf32>
    %cst_21 = arith.constant 0.000000e+00 : f32
    %18 = vector.broadcast %cst_21 : f32 to vector<2x32xf32>
    %c0_i32 = arith.constant 0 : i32
    %c7_i32 = arith.constant 7 : i32
    %19 = arith.subi %c7_i32, %c0_i32 : i32
    %20 = arith.index_cast %c0_i32 : i32 to index
    %c0_22 = arith.constant 0 : index
    %c0_23 = arith.constant 0 : index
    %21 = vector.load %arg12[%20, %c0_22, %c0_23] : memref<8x2x128xf32, #tpu.memory_space<vmem>>, vector<1x2x128xf32>
    %22 = vector.shape_cast %21 : vector<1x2x128xf32> to vector<2x128xf32>
    %cst_24 = arith.constant dense<0.000000e+00> : vector<2x128xf32>
    %23 = tpu.matmul %18, %16, %cst_24 {dimension_numbers = #tpu.dot_dimension_numbers<[1], [0], [0], [1], [0, 0, 1, 1], [], []>} : vector<2x32xf32>, vector<32x128xf32>, vector<2x128xf32> -> vector<2x128xf32>
    %24 = arith.addf %22, %23 : vector<2x128xf32>
    %25 = vector.extract_strided_slice %24 {offsets = [0, 0], sizes = [2, 32], strides = [1, 1]} : vector<2x128xf32> to vector<2x32xf32>
    %26 = arith.negf %25 : vector<2x32xf32>
    %27 = math.exp %26 : vector<2x32xf32>
    %cst_25 = arith.constant 1.000000e+00 : f32
    %28 = vector.broadcast %cst_25 : f32 to vector<2x32xf32>
    %29 = arith.addf %28, %27 : vector<2x32xf32>
    %30 = arith.divf %28, %29 : vector<2x32xf32>
    %31 = vector.extract_strided_slice %24 {offsets = [0, 32], sizes = [2, 32], strides = [1, 1]} : vector<2x128xf32> to vector<2x32xf32>
    %32 = arith.negf %31 : vector<2x32xf32>
    %33 = math.exp %32 : vector<2x32xf32>
    %cst_26 = arith.constant 1.000000e+00 : f32
    %34 = vector.broadcast %cst_26 : f32 to vector<2x32xf32>
    %35 = arith.addf %34, %33 : vector<2x32xf32>
    %36 = arith.divf %34, %35 : vector<2x32xf32>
    %37 = vector.extract_strided_slice %24 {offsets = [0, 64], sizes = [2, 32], strides = [1, 1]} : vector<2x128xf32> to vector<2x32xf32>
    %38 = math.tanh %37 : vector<2x32xf32>
    %39 = vector.extract_strided_slice %24 {offsets = [0, 96], sizes = [2, 32], strides = [1, 1]} : vector<2x128xf32> to vector<2x32xf32>
    %40 = arith.negf %39 : vector<2x32xf32>
    %41 = math.exp %40 : vector<2x32xf32>
    %cst_27 = arith.constant 1.000000e+00 : f32
    %42 = vector.broadcast %cst_27 : f32 to vector<2x32xf32>
    %43 = arith.addf %42, %41 : vector<2x32xf32>
    %44 = arith.divf %42, %43 : vector<2x32xf32>
    %45 = arith.mulf %36, %18 : vector<2x32xf32>
    %46 = arith.mulf %30, %38 : vector<2x32xf32>
    %47 = arith.addf %45, %46 : vector<2x32xf32>
    %48 = math.tanh %47 : vector<2x32xf32>
    %49 = arith.mulf %44, %48 : vector<2x32xf32>
    %50 = arith.index_cast %19 : i32 to index
    %c0_28 = arith.constant 0 : index
    %c0_29 = arith.constant 0 : index
    %51 = vector.load %arg13[%50, %c0_28, %c0_29] : memref<8x2x128xf32, #tpu.memory_space<vmem>>, vector<1x2x128xf32>
    %52 = vector.shape_cast %51 : vector<1x2x128xf32> to vector<2x128xf32>
    %cst_30 = arith.constant dense<0.000000e+00> : vector<2x128xf32>
    %53 = tpu.matmul %18, %17, %cst_30 {dimension_numbers = #tpu.dot_dimension_numbers<[1], [0], [0], [1], [0, 0, 1, 1], [], []>} : vector<2x32xf32>, vector<32x128xf32>, vector<2x128xf32> -> vector<2x128xf32>
    %54 = arith.addf %52, %53 : vector<2x128xf32>
    %55 = vector.extract_strided_slice %54 {offsets = [0, 0], sizes = [2, 32], strides = [1, 1]} : vector<2x128xf32> to vector<2x32xf32>
    %56 = arith.negf %55 : vector<2x32xf32>
    %57 = math.exp %56 : vector<2x32xf32>
    %cst_31 = arith.constant 1.000000e+00 : f32
    %58 = vector.broadcast %cst_31 : f32 to vector<2x32xf32>
    %59 = arith.addf %58, %57 : vector<2x32xf32>
    %60 = arith.divf %58, %59 : vector<2x32xf32>
    %61 = vector.extract_strided_slice %54 {offsets = [0, 32], sizes = [2, 32], strides = [1, 1]} : vector<2x128xf32> to vector<2x32xf32>
    %62 = arith.negf %61 : vector<2x32xf32>
    %63 = math.exp %62 : vector<2x32xf32>
    %cst_32 = arith.constant 1.000000e+00 : f32
    %64 = vector.broadcast %cst_32 : f32 to vector<2x32xf32>
    %65 = arith.addf %64, %63 : vector<2x32xf32>
    %66 = arith.divf %64, %65 : vector<2x32xf32>
    %67 = vector.extract_strided_slice %54 {offsets = [0, 64], sizes = [2, 32], strides = [1, 1]} : vector<2x128xf32> to vector<2x32xf32>
    %68 = math.tanh %67 : vector<2x32xf32>
    %69 = vector.extract_strided_slice %54 {offsets = [0, 96], sizes = [2, 32], strides = [1, 1]} : vector<2x128xf32> to vector<2x32xf32>
    %70 = arith.negf %69 : vector<2x32xf32>
    %71 = math.exp %70 : vector<2x32xf32>
    %cst_33 = arith.constant 1.000000e+00 : f32
    %72 = vector.broadcast %cst_33 : f32 to vector<2x32xf32>
    %73 = arith.addf %72, %71 : vector<2x32xf32>
    %74 = arith.divf %72, %73 : vector<2x32xf32>
    %75 = arith.mulf %66, %18 : vector<2x32xf32>
    %76 = arith.mulf %60, %68 : vector<2x32xf32>
    %77 = arith.addf %75, %76 : vector<2x32xf32>
    %78 = math.tanh %77 : vector<2x32xf32>
    %79 = arith.mulf %74, %78 : vector<2x32xf32>
    %80 = arith.index_cast %c0_i32 : i32 to index
    %c0_34 = arith.constant 0 : index
    %c0_35 = arith.constant 0 : index
    %81 = vector.load %arg14[%80, %c0_34, %c0_35] : memref<8x2x32xf32, #tpu.memory_space<vmem>>, vector<1x2x32xf32>
    %82 = vector.shape_cast %81 : vector<1x2x32xf32> to vector<2x32xf32>
    %83 = vector.shape_cast %49 : vector<2x32xf32> to vector<1x2x32xf32>
    tpu.vector_store %arg14[%80, %c0_34, %c0_35], %83 {strides = array<i32>} : memref<8x2x32xf32, #tpu.memory_space<vmem>>, vector<1x2x32xf32>,
    %84 = arith.index_cast %19 : i32 to index
    %c0_36 = arith.constant 0 : index
    %c0_37 = arith.constant 0 : index
    %85 = vector.load %arg15[%84, %c0_36, %c0_37] : memref<8x2x32xf32, #tpu.memory_space<vmem>>, vector<1x2x32xf32>
    %86 = vector.shape_cast %85 : vector<1x2x32xf32> to vector<2x32xf32>
    %87 = vector.shape_cast %79 : vector<2x32xf32> to vector<1x2x32xf32>
    tpu.vector_store %arg15[%84, %c0_36, %c0_37], %87 {strides = array<i32>} : memref<8x2x32xf32, #tpu.memory_space<vmem>>, vector<1x2x32xf32>,
    %c1_i32 = arith.constant 1 : i32
    %c7_i32_38 = arith.constant 7 : i32
    %88 = arith.subi %c7_i32_38, %c1_i32 : i32
    %89 = arith.index_cast %c1_i32 : i32 to index
    %c0_39 = arith.constant 0 : index
    %c0_40 = arith.constant 0 : index
    %90 = vector.load %arg12[%89, %c0_39, %c0_40] : memref<8x2x128xf32, #tpu.memory_space<vmem>>, vector<1x2x128xf32>
    %91 = vector.shape_cast %90 : vector<1x2x128xf32> to vector<2x128xf32>
    %cst_41 = arith.constant dense<0.000000e+00> : vector<2x128xf32>
    %92 = tpu.matmul %49, %16, %cst_41 {dimension_numbers = #tpu.dot_dimension_numbers<[1], [0], [0], [1], [0, 0, 1, 1], [], []>} : vector<2x32xf32>, vector<32x128xf32>, vector<2x128xf32> -> vector<2x128xf32>
    %93 = arith.addf %91, %92 : vector<2x128xf32>
    %94 = vector.extract_strided_slice %93 {offsets = [0, 0], sizes = [2, 32], strides = [1, 1]} : vector<2x128xf32> to vector<2x32xf32>
    %95 = arith.negf %94 : vector<2x32xf32>
    %96 = math.exp %95 : vector<2x32xf32>
    %cst_42 = arith.constant 1.000000e+00 : f32
    %97 = vector.broadcast %cst_42 : f32 to vector<2x32xf32>
    %98 = arith.addf %97, %96 : vector<2x32xf32>
    %99 = arith.divf %97, %98 : vector<2x32xf32>
    %100 = vector.extract_strided_slice %93 {offsets = [0, 32], sizes = [2, 32], strides = [1, 1]} : vector<2x128xf32> to vector<2x32xf32>
    %101 = arith.negf %100 : vector<2x32xf32>
    %102 = math.exp %101 : vector<2x32xf32>
    %cst_43 = arith.constant 1.000000e+00 : f32
    %103 = vector.broadcast %cst_43 : f32 to vector<2x32xf32>
    %104 = arith.addf %103, %102 : vector<2x32xf32>
    %105 = arith.divf %103, %104 : vector<2x32xf32>
    %106 = vector.extract_strided_slice %93 {offsets = [0, 64], sizes = [2, 32], strides = [1, 1]} : vector<2x128xf32> to vector<2x32xf32>
    %107 = math.tanh %106 : vector<2x32xf32>
    %108 = vector.extract_strided_slice %93 {offsets = [0, 96], sizes = [2, 32], strides = [1, 1]} : vector<2x128xf32> to vector<2x32xf32>
    %109 = arith.negf %108 : vector<2x32xf32>
    %110 = math.exp %109 : vector<2x32xf32>
    %cst_44 = arith.constant 1.000000e+00 : f32
    %111 = vector.broadcast %cst_44 : f32 to vector<2x32xf32>
    %112 = arith.addf %111, %110 : vector<2x32xf32>
    %113 = arith.divf %111, %112 : vector<2x32xf32>
    %114 = arith.mulf %105, %47 : vector<2x32xf32>
    %115 = arith.mulf %99, %107 : vector<2x32xf32>
    %116 = arith.addf %114, %115 : vector<2x32xf32>
    %117 = math.tanh %116 : vector<2x32xf32>
    %118 = arith.mulf %113, %117 : vector<2x32xf32>
    %119 = arith.index_cast %88 : i32 to index
    %c0_45 = arith.constant 0 : index
    %c0_46 = arith.constant 0 : index
    %120 = vector.load %arg13[%119, %c0_45, %c0_46] : memref<8x2x128xf32, #tpu.memory_space<vmem>>, vector<1x2x128xf32>
    %121 = vector.shape_cast %120 : vector<1x2x128xf32> to vector<2x128xf32>
    %cst_47 = arith.constant dense<0.000000e+00> : vector<2x128xf32>
    %122 = tpu.matmul %79, %17, %cst_47 {dimension_numbers = #tpu.dot_dimension_numbers<[1], [0], [0], [1], [0, 0, 1, 1], [], []>} : vector<2x32xf32>, vector<32x128xf32>, vector<2x128xf32> -> vector<2x128xf32>
    %123 = arith.addf %121, %122 : vector<2x128xf32>
    %124 = vector.extract_strided_slice %123 {offsets = [0, 0], sizes = [2, 32], strides = [1, 1]} : vector<2x128xf32> to vector<2x32xf32>
    %125 = arith.negf %124 : vector<2x32xf32>
    %126 = math.exp %125 : vector<2x32xf32>
    %cst_48 = arith.constant 1.000000e+00 : f32
    %127 = vector.broadcast %cst_48 : f32 to vector<2x32xf32>
    %128 = arith.addf %127, %126 : vector<2x32xf32>
    %129 = arith.divf %127, %128 : vector<2x32xf32>
    %130 = vector.extract_strided_slice %123 {offsets = [0, 32], sizes = [2, 32], strides = [1, 1]} : vector<2x128xf32> to vector<2x32xf32>
    %131 = arith.negf %130 : vector<2x32xf32>
    %132 = math.exp %131 : vector<2x32xf32>
    %cst_49 = arith.constant 1.000000e+00 : f32
    %133 = vector.broadcast %cst_49 : f32 to vector<2x32xf32>
    %134 = arith.addf %133, %132 : vector<2x32xf32>
    %135 = arith.divf %133, %134 : vector<2x32xf32>
    %136 = vector.extract_strided_slice %123 {offsets = [0, 64], sizes = [2, 32], strides = [1, 1]} : vector<2x128xf32> to vector<2x32xf32>
    %137 = math.tanh %136 : vector<2x32xf32>
    %138 = vector.extract_strided_slice %123 {offsets = [0, 96], sizes = [2, 32], strides = [1, 1]} : vector<2x128xf32> to vector<2x32xf32>
    %139 = arith.negf %138 : vector<2x32xf32>
    %140 = math.exp %139 : vector<2x32xf32>
    %cst_50 = arith.constant 1.000000e+00 : f32
    %141 = vector.broadcast %cst_50 : f32 to vector<2x32xf32>
    %142 = arith.addf %141, %140 : vector<2x32xf32>
    %143 = arith.divf %141, %142 : vector<2x32xf32>
    %144 = arith.mulf %135, %77 : vector<2x32xf32>
    %145 = arith.mulf %129, %137 : vector<2x32xf32>
    %146 = arith.addf %144, %145 : vector<2x32xf32>
    %147 = math.tanh %146 : vector<2x32xf32>
    %148 = arith.mulf %143, %147 : vector<2x32xf32>
    %149 = arith.index_cast %c1_i32 : i32 to index
    %c0_51 = arith.constant 0 : index
    %c0_52 = arith.constant 0 : index
    %150 = vector.load %arg14[%149, %c0_51, %c0_52] : memref<8x2x32xf32, #tpu.memory_space<vmem>>, vector<1x2x32xf32>
    %151 = vector.shape_cast %150 : vector<1x2x32xf32> to vector<2x32xf32>
    %152 = vector.shape_cast %118 : vector<2x32xf32> to vector<1x2x32xf32>
    tpu.vector_store %arg14[%149, %c0_51, %c0_52], %152 {strides = array<i32>} : memref<8x2x32xf32, #tpu.memory_space<vmem>>, vector<1x2x32xf32>,
    %153 = arith.index_cast %88 : i32 to index
    %c0_53 = arith.constant 0 : index
    %c0_54 = arith.constant 0 : index
    %154 = vector.load %arg15[%153, %c0_53, %c0_54] : memref<8x2x32xf32, #tpu.memory_space<vmem>>, vector<1x2x32xf32>
    %155 = vector.shape_cast %154 : vector<1x2x32xf32> to vector<2x32xf32>
    %156 = vector.shape_cast %148 : vector<2x32xf32> to vector<1x2x32xf32>
    tpu.vector_store %arg15[%153, %c0_53, %c0_54], %156 {strides = array<i32>} : memref<8x2x32xf32, #tpu.memory_space<vmem>>, vector<1x2x32xf32>,
    %c2_i32 = arith.constant 2 : i32
    %c7_i32_55 = arith.constant 7 : i32
    %157 = arith.subi %c7_i32_55, %c2_i32 : i32
    %158 = arith.index_cast %c2_i32 : i32 to index
    %c0_56 = arith.constant 0 : index
    %c0_57 = arith.constant 0 : index
    %159 = vector.load %arg12[%158, %c0_56, %c0_57] : memref<8x2x128xf32, #tpu.memory_space<vmem>>, vector<1x2x128xf32>
    %160 = vector.shape_cast %159 : vector<1x2x128xf32> to vector<2x128xf32>
    %cst_58 = arith.constant dense<0.000000e+00> : vector<2x128xf32>
    %161 = tpu.matmul %118, %16, %cst_58 {dimension_numbers = #tpu.dot_dimension_numbers<[1], [0], [0], [1], [0, 0, 1, 1], [], []>} : vector<2x32xf32>, vector<32x128xf32>, vector<2x128xf32> -> vector<2x128xf32>
    %162 = arith.addf %160, %161 : vector<2x128xf32>
    %163 = vector.extract_strided_slice %162 {offsets = [0, 0], sizes = [2, 32], strides = [1, 1]} : vector<2x128xf32> to vector<2x32xf32>
    %164 = arith.negf %163 : vector<2x32xf32>
    %165 = math.exp %164 : vector<2x32xf32>
    %cst_59 = arith.constant 1.000000e+00 : f32
    %166 = vector.broadcast %cst_59 : f32 to vector<2x32xf32>
    %167 = arith.addf %166, %165 : vector<2x32xf32>
    %168 = arith.divf %166, %167 : vector<2x32xf32>
    %169 = vector.extract_strided_slice %162 {offsets = [0, 32], sizes = [2, 32], strides = [1, 1]} : vector<2x128xf32> to vector<2x32xf32>
    %170 = arith.negf %169 : vector<2x32xf32>
    %171 = math.exp %170 : vector<2x32xf32>
    %cst_60 = arith.constant 1.000000e+00 : f32
    %172 = vector.broadcast %cst_60 : f32 to vector<2x32xf32>
    %173 = arith.addf %172, %171 : vector<2x32xf32>
    %174 = arith.divf %172, %173 : vector<2x32xf32>
    %175 = vector.extract_strided_slice %162 {offsets = [0, 64], sizes = [2, 32], strides = [1, 1]} : vector<2x128xf32> to vector<2x32xf32>
    %176 = math.tanh %175 : vector<2x32xf32>
    %177 = vector.extract_strided_slice %162 {offsets = [0, 96], sizes = [2, 32], strides = [1, 1]} : vector<2x128xf32> to vector<2x32xf32>
    %178 = arith.negf %177 : vector<2x32xf32>
    %179 = math.exp %178 : vector<2x32xf32>
    %cst_61 = arith.constant 1.000000e+00 : f32
    %180 = vector.broadcast %cst_61 : f32 to vector<2x32xf32>
    %181 = arith.addf %180, %179 : vector<2x32xf32>
    %182 = arith.divf %180, %181 : vector<2x32xf32>
    %183 = arith.mulf %174, %116 : vector<2x32xf32>
    %184 = arith.mulf %168, %176 : vector<2x32xf32>
    %185 = arith.addf %183, %184 : vector<2x32xf32>
    %186 = math.tanh %185 : vector<2x32xf32>
    %187 = arith.mulf %182, %186 : vector<2x32xf32>
    %188 = arith.index_cast %157 : i32 to index
    %c0_62 = arith.constant 0 : index
    %c0_63 = arith.constant 0 : index
    %189 = vector.load %arg13[%188, %c0_62, %c0_63] : memref<8x2x128xf32, #tpu.memory_space<vmem>>, vector<1x2x128xf32>
    %190 = vector.shape_cast %189 : vector<1x2x128xf32> to vector<2x128xf32>
    %cst_64 = arith.constant dense<0.000000e+00> : vector<2x128xf32>
    %191 = tpu.matmul %148, %17, %cst_64 {dimension_numbers = #tpu.dot_dimension_numbers<[1], [0], [0], [1], [0, 0, 1, 1], [], []>} : vector<2x32xf32>, vector<32x128xf32>, vector<2x128xf32> -> vector<2x128xf32>
    %192 = arith.addf %190, %191 : vector<2x128xf32>
    %193 = vector.extract_strided_slice %192 {offsets = [0, 0], sizes = [2, 32], strides = [1, 1]} : vector<2x128xf32> to vector<2x32xf32>
    %194 = arith.negf %193 : vector<2x32xf32>
    %195 = math.exp %194 : vector<2x32xf32>
    %cst_65 = arith.constant 1.000000e+00 : f32
    %196 = vector.broadcast %cst_65 : f32 to vector<2x32xf32>
    %197 = arith.addf %196, %195 : vector<2x32xf32>
    %198 = arith.divf %196, %197 : vector<2x32xf32>
    %199 = vector.extract_strided_slice %192 {offsets = [0, 32], sizes = [2, 32], strides = [1, 1]} : vector<2x128xf32> to vector<2x32xf32>
    %200 = arith.negf %199 : vector<2x32xf32>
    %201 = math.exp %200 : vector<2x32xf32>
    %cst_66 = arith.constant 1.000000e+00 : f32
    %202 = vector.broadcast %cst_66 : f32 to vector<2x32xf32>
    %203 = arith.addf %202, %201 : vector<2x32xf32>
    %204 = arith.divf %202, %203 : vector<2x32xf32>
    %205 = vector.extract_strided_slice %192 {offsets = [0, 64], sizes = [2, 32], strides = [1, 1]} : vector<2x128xf32> to vector<2x32xf32>
    %206 = math.tanh %205 : vector<2x32xf32>
    %207 = vector.extract_strided_slice %192 {offsets = [0, 96], sizes = [2, 32], strides = [1, 1]} : vector<2x128xf32> to vector<2x32xf32>
    %208 = arith.negf %207 : vector<2x32xf32>
    %209 = math.exp %208 : vector<2x32xf32>
    %cst_67 = arith.constant 1.000000e+00 : f32
    %210 = vector.broadcast %cst_67 : f32 to vector<2x32xf32>
    %211 = arith.addf %210, %209 : vector<2x32xf32>
    %212 = arith.divf %210, %211 : vector<2x32xf32>
    %213 = arith.mulf %204, %146 : vector<2x32xf32>
    %214 = arith.mulf %198, %206 : vector<2x32xf32>
    %215 = arith.addf %213, %214 : vector<2x32xf32>
    %216 = math.tanh %215 : vector<2x32xf32>
    %217 = arith.mulf %212, %216 : vector<2x32xf32>
    %218 = arith.index_cast %c2_i32 : i32 to index
    %c0_68 = arith.constant 0 : index
    %c0_69 = arith.constant 0 : index
    %219 = vector.load %arg14[%218, %c0_68, %c0_69] : memref<8x2x32xf32, #tpu.memory_space<vmem>>, vector<1x2x32xf32>
    %220 = vector.shape_cast %219 : vector<1x2x32xf32> to vector<2x32xf32>
    %221 = vector.shape_cast %187 : vector<2x32xf32> to vector<1x2x32xf32>
    tpu.vector_store %arg14[%218, %c0_68, %c0_69], %221 {strides = array<i32>} : memref<8x2x32xf32, #tpu.memory_space<vmem>>, vector<1x2x32xf32>,
    %222 = arith.index_cast %157 : i32 to index
    %c0_70 = arith.constant 0 : index
    %c0_71 = arith.constant 0 : index
    %223 = vector.load %arg15[%222, %c0_70, %c0_71] : memref<8x2x32xf32, #tpu.memory_space<vmem>>, vector<1x2x32xf32>
    %224 = vector.shape_cast %223 : vector<1x2x32xf32> to vector<2x32xf32>
    %225 = vector.shape_cast %217 : vector<2x32xf32> to vector<1x2x32xf32>
    tpu.vector_store %arg15[%222, %c0_70, %c0_71], %225 {strides = array<i32>} : memref<8x2x32xf32, #tpu.memory_space<vmem>>, vector<1x2x32xf32>,
    %c3_i32 = arith.constant 3 : i32
    %c7_i32_72 = arith.constant 7 : i32
    %226 = arith.subi %c7_i32_72, %c3_i32 : i32
    %227 = arith.index_cast %c3_i32 : i32 to index
    %c0_73 = arith.constant 0 : index
    %c0_74 = arith.constant 0 : index
    %228 = vector.load %arg12[%227, %c0_73, %c0_74] : memref<8x2x128xf32, #tpu.memory_space<vmem>>, vector<1x2x128xf32>
    %229 = vector.shape_cast %228 : vector<1x2x128xf32> to vector<2x128xf32>
    %cst_75 = arith.constant dense<0.000000e+00> : vector<2x128xf32>
    %230 = tpu.matmul %187, %16, %cst_75 {dimension_numbers = #tpu.dot_dimension_numbers<[1], [0], [0], [1], [0, 0, 1, 1], [], []>} : vector<2x32xf32>, vector<32x128xf32>, vector<2x128xf32> -> vector<2x128xf32>
    %231 = arith.addf %229, %230 : vector<2x128xf32>
    %232 = vector.extract_strided_slice %231 {offsets = [0, 0], sizes = [2, 32], strides = [1, 1]} : vector<2x128xf32> to vector<2x32xf32>
    %233 = arith.negf %232 : vector<2x32xf32>
    %234 = math.exp %233 : vector<2x32xf32>
    %cst_76 = arith.constant 1.000000e+00 : f32
    %235 = vector.broadcast %cst_76 : f32 to vector<2x32xf32>
    %236 = arith.addf %235, %234 : vector<2x32xf32>
    %237 = arith.divf %235, %236 : vector<2x32xf32>
    %238 = vector.extract_strided_slice %231 {offsets = [0, 32], sizes = [2, 32], strides = [1, 1]} : vector<2x128xf32> to vector<2x32xf32>
    %239 = arith.negf %238 : vector<2x32xf32>
    %240 = math.exp %239 : vector<2x32xf32>
    %cst_77 = arith.constant 1.000000e+00 : f32
    %241 = vector.broadcast %cst_77 : f32 to vector<2x32xf32>
    %242 = arith.addf %241, %240 : vector<2x32xf32>
    %243 = arith.divf %241, %242 : vector<2x32xf32>
    %244 = vector.extract_strided_slice %231 {offsets = [0, 64], sizes = [2, 32], strides = [1, 1]} : vector<2x128xf32> to vector<2x32xf32>
    %245 = math.tanh %244 : vector<2x32xf32>
    %246 = vector.extract_strided_slice %231 {offsets = [0, 96], sizes = [2, 32], strides = [1, 1]} : vector<2x128xf32> to vector<2x32xf32>
    %247 = arith.negf %246 : vector<2x32xf32>
    %248 = math.exp %247 : vector<2x32xf32>
    %cst_78 = arith.constant 1.000000e+00 : f32
    %249 = vector.broadcast %cst_78 : f32 to vector<2x32xf32>
    %250 = arith.addf %249, %248 : vector<2x32xf32>
    %251 = arith.divf %249, %250 : vector<2x32xf32>
    %252 = arith.mulf %243, %185 : vector<2x32xf32>
    %253 = arith.mulf %237, %245 : vector<2x32xf32>
    %254 = arith.addf %252, %253 : vector<2x32xf32>
    %255 = math.tanh %254 : vector<2x32xf32>
    %256 = arith.mulf %251, %255 : vector<2x32xf32>
    %257 = arith.index_cast %226 : i32 to index
    %c0_79 = arith.constant 0 : index
    %c0_80 = arith.constant 0 : index
    %258 = vector.load %arg13[%257, %c0_79, %c0_80] : memref<8x2x128xf32, #tpu.memory_space<vmem>>, vector<1x2x128xf32>
    %259 = vector.shape_cast %258 : vector<1x2x128xf32> to vector<2x128xf32>
    %cst_81 = arith.constant dense<0.000000e+00> : vector<2x128xf32>
    %260 = tpu.matmul %217, %17, %cst_81 {dimension_numbers = #tpu.dot_dimension_numbers<[1], [0], [0], [1], [0, 0, 1, 1], [], []>} : vector<2x32xf32>, vector<32x128xf32>, vector<2x128xf32> -> vector<2x128xf32>
    %261 = arith.addf %259, %260 : vector<2x128xf32>
    %262 = vector.extract_strided_slice %261 {offsets = [0, 0], sizes = [2, 32], strides = [1, 1]} : vector<2x128xf32> to vector<2x32xf32>
    %263 = arith.negf %262 : vector<2x32xf32>
    %264 = math.exp %263 : vector<2x32xf32>
    %cst_82 = arith.constant 1.000000e+00 : f32
    %265 = vector.broadcast %cst_82 : f32 to vector<2x32xf32>
    %266 = arith.addf %265, %264 : vector<2x32xf32>
    %267 = arith.divf %265, %266 : vector<2x32xf32>
    %268 = vector.extract_strided_slice %261 {offsets = [0, 32], sizes = [2, 32], strides = [1, 1]} : vector<2x128xf32> to vector<2x32xf32>
    %269 = arith.negf %268 : vector<2x32xf32>
    %270 = math.exp %269 : vector<2x32xf32>
    %cst_83 = arith.constant 1.000000e+00 : f32
    %271 = vector.broadcast %cst_83 : f32 to vector<2x32xf32>
    %272 = arith.addf %271, %270 : vector<2x32xf32>
    %273 = arith.divf %271, %272 : vector<2x32xf32>
    %274 = vector.extract_strided_slice %261 {offsets = [0, 64], sizes = [2, 32], strides = [1, 1]} : vector<2x128xf32> to vector<2x32xf32>
    %275 = math.tanh %274 : vector<2x32xf32>
    %276 = vector.extract_strided_slice %261 {offsets = [0, 96], sizes = [2, 32], strides = [1, 1]} : vector<2x128xf32> to vector<2x32xf32>
    %277 = arith.negf %276 : vector<2x32xf32>
    %278 = math.exp %277 : vector<2x32xf32>
    %cst_84 = arith.constant 1.000000e+00 : f32
    %279 = vector.broadcast %cst_84 : f32 to vector<2x32xf32>
    %280 = arith.addf %279, %278 : vector<2x32xf32>
    %281 = arith.divf %279, %280 : vector<2x32xf32>
    %282 = arith.mulf %273, %215 : vector<2x32xf32>
    %283 = arith.mulf %267, %275 : vector<2x32xf32>
    %284 = arith.addf %282, %283 : vector<2x32xf32>
    %285 = math.tanh %284 : vector<2x32xf32>
    %286 = arith.mulf %281, %285 : vector<2x32xf32>
    %287 = arith.index_cast %c3_i32 : i32 to index
    %c0_85 = arith.constant 0 : index
    %c0_86 = arith.constant 0 : index
    %288 = vector.load %arg14[%287, %c0_85, %c0_86] : memref<8x2x32xf32, #tpu.memory_space<vmem>>, vector<1x2x32xf32>
    %289 = vector.shape_cast %288 : vector<1x2x32xf32> to vector<2x32xf32>
    %290 = vector.shape_cast %256 : vector<2x32xf32> to vector<1x2x32xf32>
    tpu.vector_store %arg14[%287, %c0_85, %c0_86], %290 {strides = array<i32>} : memref<8x2x32xf32, #tpu.memory_space<vmem>>, vector<1x2x32xf32>,
    %291 = arith.index_cast %226 : i32 to index
    %c0_87 = arith.constant 0 : index
    %c0_88 = arith.constant 0 : index
    %292 = vector.load %arg15[%291, %c0_87, %c0_88] : memref<8x2x32xf32, #tpu.memory_space<vmem>>, vector<1x2x32xf32>
    %293 = vector.shape_cast %292 : vector<1x2x32xf32> to vector<2x32xf32>
    %294 = vector.shape_cast %286 : vector<2x32xf32> to vector<1x2x32xf32>
    tpu.vector_store %arg15[%291, %c0_87, %c0_88], %294 {strides = array<i32>} : memref<8x2x32xf32, #tpu.memory_space<vmem>>, vector<1x2x32xf32>,
    %c4_i32 = arith.constant 4 : i32
    %c7_i32_89 = arith.constant 7 : i32
    %295 = arith.subi %c7_i32_89, %c4_i32 : i32
    %296 = arith.index_cast %c4_i32 : i32 to index
    %c0_90 = arith.constant 0 : index
    %c0_91 = arith.constant 0 : index
    %297 = vector.load %arg12[%296, %c0_90, %c0_91] : memref<8x2x128xf32, #tpu.memory_space<vmem>>, vector<1x2x128xf32>
    %298 = vector.shape_cast %297 : vector<1x2x128xf32> to vector<2x128xf32>
    %cst_92 = arith.constant dense<0.000000e+00> : vector<2x128xf32>
    %299 = tpu.matmul %256, %16, %cst_92 {dimension_numbers = #tpu.dot_dimension_numbers<[1], [0], [0], [1], [0, 0, 1, 1], [], []>} : vector<2x32xf32>, vector<32x128xf32>, vector<2x128xf32> -> vector<2x128xf32>
    %300 = arith.addf %298, %299 : vector<2x128xf32>
    %301 = vector.extract_strided_slice %300 {offsets = [0, 0], sizes = [2, 32], strides = [1, 1]} : vector<2x128xf32> to vector<2x32xf32>
    %302 = arith.negf %301 : vector<2x32xf32>
    %303 = math.exp %302 : vector<2x32xf32>
    %cst_93 = arith.constant 1.000000e+00 : f32
    %304 = vector.broadcast %cst_93 : f32 to vector<2x32xf32>
    %305 = arith.addf %304, %303 : vector<2x32xf32>
    %306 = arith.divf %304, %305 : vector<2x32xf32>
    %307 = vector.extract_strided_slice %300 {offsets = [0, 32], sizes = [2, 32], strides = [1, 1]} : vector<2x128xf32> to vector<2x32xf32>
    %308 = arith.negf %307 : vector<2x32xf32>
    %309 = math.exp %308 : vector<2x32xf32>
    %cst_94 = arith.constant 1.000000e+00 : f32
    %310 = vector.broadcast %cst_94 : f32 to vector<2x32xf32>
    %311 = arith.addf %310, %309 : vector<2x32xf32>
    %312 = arith.divf %310, %311 : vector<2x32xf32>
    %313 = vector.extract_strided_slice %300 {offsets = [0, 64], sizes = [2, 32], strides = [1, 1]} : vector<2x128xf32> to vector<2x32xf32>
    %314 = math.tanh %313 : vector<2x32xf32>
    %315 = vector.extract_strided_slice %300 {offsets = [0, 96], sizes = [2, 32], strides = [1, 1]} : vector<2x128xf32> to vector<2x32xf32>
    %316 = arith.negf %315 : vector<2x32xf32>
    %317 = math.exp %316 : vector<2x32xf32>
    %cst_95 = arith.constant 1.000000e+00 : f32
    %318 = vector.broadcast %cst_95 : f32 to vector<2x32xf32>
    %319 = arith.addf %318, %317 : vector<2x32xf32>
    %320 = arith.divf %318, %319 : vector<2x32xf32>
    %321 = arith.mulf %312, %254 : vector<2x32xf32>
    %322 = arith.mulf %306, %314 : vector<2x32xf32>
    %323 = arith.addf %321, %322 : vector<2x32xf32>
    %324 = math.tanh %323 : vector<2x32xf32>
    %325 = arith.mulf %320, %324 : vector<2x32xf32>
    %326 = arith.index_cast %295 : i32 to index
    %c0_96 = arith.constant 0 : index
    %c0_97 = arith.constant 0 : index
    %327 = vector.load %arg13[%326, %c0_96, %c0_97] : memref<8x2x128xf32, #tpu.memory_space<vmem>>, vector<1x2x128xf32>
    %328 = vector.shape_cast %327 : vector<1x2x128xf32> to vector<2x128xf32>
    %cst_98 = arith.constant dense<0.000000e+00> : vector<2x128xf32>
    %329 = tpu.matmul %286, %17, %cst_98 {dimension_numbers = #tpu.dot_dimension_numbers<[1], [0], [0], [1], [0, 0, 1, 1], [], []>} : vector<2x32xf32>, vector<32x128xf32>, vector<2x128xf32> -> vector<2x128xf32>
    %330 = arith.addf %328, %329 : vector<2x128xf32>
    %331 = vector.extract_strided_slice %330 {offsets = [0, 0], sizes = [2, 32], strides = [1, 1]} : vector<2x128xf32> to vector<2x32xf32>
    %332 = arith.negf %331 : vector<2x32xf32>
    %333 = math.exp %332 : vector<2x32xf32>
    %cst_99 = arith.constant 1.000000e+00 : f32
    %334 = vector.broadcast %cst_99 : f32 to vector<2x32xf32>
    %335 = arith.addf %334, %333 : vector<2x32xf32>
    %336 = arith.divf %334, %335 : vector<2x32xf32>
    %337 = vector.extract_strided_slice %330 {offsets = [0, 32], sizes = [2, 32], strides = [1, 1]} : vector<2x128xf32> to vector<2x32xf32>
    %338 = arith.negf %337 : vector<2x32xf32>
    %339 = math.exp %338 : vector<2x32xf32>
    %cst_100 = arith.constant 1.000000e+00 : f32
    %340 = vector.broadcast %cst_100 : f32 to vector<2x32xf32>
    %341 = arith.addf %340, %339 : vector<2x32xf32>
    %342 = arith.divf %340, %341 : vector<2x32xf32>
    %343 = vector.extract_strided_slice %330 {offsets = [0, 64], sizes = [2, 32], strides = [1, 1]} : vector<2x128xf32> to vector<2x32xf32>
    %344 = math.tanh %343 : vector<2x32xf32>
    %345 = vector.extract_strided_slice %330 {offsets = [0, 96], sizes = [2, 32], strides = [1, 1]} : vector<2x128xf32> to vector<2x32xf32>
    %346 = arith.negf %345 : vector<2x32xf32>
    %347 = math.exp %346 : vector<2x32xf32>
    %cst_101 = arith.constant 1.000000e+00 : f32
    %348 = vector.broadcast %cst_101 : f32 to vector<2x32xf32>
    %349 = arith.addf %348, %347 : vector<2x32xf32>
    %350 = arith.divf %348, %349 : vector<2x32xf32>
    %351 = arith.mulf %342, %284 : vector<2x32xf32>
    %352 = arith.mulf %336, %344 : vector<2x32xf32>
    %353 = arith.addf %351, %352 : vector<2x32xf32>
    %354 = math.tanh %353 : vector<2x32xf32>
    %355 = arith.mulf %350, %354 : vector<2x32xf32>
    %356 = arith.index_cast %c4_i32 : i32 to index
    %c0_102 = arith.constant 0 : index
    %c0_103 = arith.constant 0 : index
    %357 = vector.load %arg14[%356, %c0_102, %c0_103] : memref<8x2x32xf32, #tpu.memory_space<vmem>>, vector<1x2x32xf32>
    %358 = vector.shape_cast %357 : vector<1x2x32xf32> to vector<2x32xf32>
    %359 = vector.shape_cast %325 : vector<2x32xf32> to vector<1x2x32xf32>
    tpu.vector_store %arg14[%356, %c0_102, %c0_103], %359 {strides = array<i32>} : memref<8x2x32xf32, #tpu.memory_space<vmem>>, vector<1x2x32xf32>,
    %360 = arith.index_cast %295 : i32 to index
    %c0_104 = arith.constant 0 : index
    %c0_105 = arith.constant 0 : index
    %361 = vector.load %arg15[%360, %c0_104, %c0_105] : memref<8x2x32xf32, #tpu.memory_space<vmem>>, vector<1x2x32xf32>
    %362 = vector.shape_cast %361 : vector<1x2x32xf32> to vector<2x32xf32>
    %363 = vector.shape_cast %355 : vector<2x32xf32> to vector<1x2x32xf32>
    tpu.vector_store %arg15[%360, %c0_104, %c0_105], %363 {strides = array<i32>} : memref<8x2x32xf32, #tpu.memory_space<vmem>>, vector<1x2x32xf32>,
    %c5_i32 = arith.constant 5 : i32
    %c7_i32_106 = arith.constant 7 : i32
    %364 = arith.subi %c7_i32_106, %c5_i32 : i32
    %365 = arith.index_cast %c5_i32 : i32 to index
    %c0_107 = arith.constant 0 : index
    %c0_108 = arith.constant 0 : index
    %366 = vector.load %arg12[%365, %c0_107, %c0_108] : memref<8x2x128xf32, #tpu.memory_space<vmem>>, vector<1x2x128xf32>
    %367 = vector.shape_cast %366 : vector<1x2x128xf32> to vector<2x128xf32>
    %cst_109 = arith.constant dense<0.000000e+00> : vector<2x128xf32>
    %368 = tpu.matmul %325, %16, %cst_109 {dimension_numbers = #tpu.dot_dimension_numbers<[1], [0], [0], [1], [0, 0, 1, 1], [], []>} : vector<2x32xf32>, vector<32x128xf32>, vector<2x128xf32> -> vector<2x128xf32>
    %369 = arith.addf %367, %368 : vector<2x128xf32>
    %370 = vector.extract_strided_slice %369 {offsets = [0, 0], sizes = [2, 32], strides = [1, 1]} : vector<2x128xf32> to vector<2x32xf32>
    %371 = arith.negf %370 : vector<2x32xf32>
    %372 = math.exp %371 : vector<2x32xf32>
    %cst_110 = arith.constant 1.000000e+00 : f32
    %373 = vector.broadcast %cst_110 : f32 to vector<2x32xf32>
    %374 = arith.addf %373, %372 : vector<2x32xf32>
    %375 = arith.divf %373, %374 : vector<2x32xf32>
    %376 = vector.extract_strided_slice %369 {offsets = [0, 32], sizes = [2, 32], strides = [1, 1]} : vector<2x128xf32> to vector<2x32xf32>
    %377 = arith.negf %376 : vector<2x32xf32>
    %378 = math.exp %377 : vector<2x32xf32>
    %cst_111 = arith.constant 1.000000e+00 : f32
    %379 = vector.broadcast %cst_111 : f32 to vector<2x32xf32>
    %380 = arith.addf %379, %378 : vector<2x32xf32>
    %381 = arith.divf %379, %380 : vector<2x32xf32>
    %382 = vector.extract_strided_slice %369 {offsets = [0, 64], sizes = [2, 32], strides = [1, 1]} : vector<2x128xf32> to vector<2x32xf32>
    %383 = math.tanh %382 : vector<2x32xf32>
    %384 = vector.extract_strided_slice %369 {offsets = [0, 96], sizes = [2, 32], strides = [1, 1]} : vector<2x128xf32> to vector<2x32xf32>
    %385 = arith.negf %384 : vector<2x32xf32>
    %386 = math.exp %385 : vector<2x32xf32>
    %cst_112 = arith.constant 1.000000e+00 : f32
    %387 = vector.broadcast %cst_112 : f32 to vector<2x32xf32>
    %388 = arith.addf %387, %386 : vector<2x32xf32>
    %389 = arith.divf %387, %388 : vector<2x32xf32>
    %390 = arith.mulf %381, %323 : vector<2x32xf32>
    %391 = arith.mulf %375, %383 : vector<2x32xf32>
    %392 = arith.addf %390, %391 : vector<2x32xf32>
    %393 = math.tanh %392 : vector<2x32xf32>
    %394 = arith.mulf %389, %393 : vector<2x32xf32>
    %395 = arith.index_cast %364 : i32 to index
    %c0_113 = arith.constant 0 : index
    %c0_114 = arith.constant 0 : index
    %396 = vector.load %arg13[%395, %c0_113, %c0_114] : memref<8x2x128xf32, #tpu.memory_space<vmem>>, vector<1x2x128xf32>
    %397 = vector.shape_cast %396 : vector<1x2x128xf32> to vector<2x128xf32>
    %cst_115 = arith.constant dense<0.000000e+00> : vector<2x128xf32>
    %398 = tpu.matmul %355, %17, %cst_115 {dimension_numbers = #tpu.dot_dimension_numbers<[1], [0], [0], [1], [0, 0, 1, 1], [], []>} : vector<2x32xf32>, vector<32x128xf32>, vector<2x128xf32> -> vector<2x128xf32>
    %399 = arith.addf %397, %398 : vector<2x128xf32>
    %400 = vector.extract_strided_slice %399 {offsets = [0, 0], sizes = [2, 32], strides = [1, 1]} : vector<2x128xf32> to vector<2x32xf32>
    %401 = arith.negf %400 : vector<2x32xf32>
    %402 = math.exp %401 : vector<2x32xf32>
    %cst_116 = arith.constant 1.000000e+00 : f32
    %403 = vector.broadcast %cst_116 : f32 to vector<2x32xf32>
    %404 = arith.addf %403, %402 : vector<2x32xf32>
    %405 = arith.divf %403, %404 : vector<2x32xf32>
    %406 = vector.extract_strided_slice %399 {offsets = [0, 32], sizes = [2, 32], strides = [1, 1]} : vector<2x128xf32> to vector<2x32xf32>
    %407 = arith.negf %406 : vector<2x32xf32>
    %408 = math.exp %407 : vector<2x32xf32>
    %cst_117 = arith.constant 1.000000e+00 : f32
    %409 = vector.broadcast %cst_117 : f32 to vector<2x32xf32>
    %410 = arith.addf %409, %408 : vector<2x32xf32>
    %411 = arith.divf %409, %410 : vector<2x32xf32>
    %412 = vector.extract_strided_slice %399 {offsets = [0, 64], sizes = [2, 32], strides = [1, 1]} : vector<2x128xf32> to vector<2x32xf32>
    %413 = math.tanh %412 : vector<2x32xf32>
    %414 = vector.extract_strided_slice %399 {offsets = [0, 96], sizes = [2, 32], strides = [1, 1]} : vector<2x128xf32> to vector<2x32xf32>
    %415 = arith.negf %414 : vector<2x32xf32>
    %416 = math.exp %415 : vector<2x32xf32>
    %cst_118 = arith.constant 1.000000e+00 : f32
    %417 = vector.broadcast %cst_118 : f32 to vector<2x32xf32>
    %418 = arith.addf %417, %416 : vector<2x32xf32>
    %419 = arith.divf %417, %418 : vector<2x32xf32>
    %420 = arith.mulf %411, %353 : vector<2x32xf32>
    %421 = arith.mulf %405, %413 : vector<2x32xf32>
    %422 = arith.addf %420, %421 : vector<2x32xf32>
    %423 = math.tanh %422 : vector<2x32xf32>
    %424 = arith.mulf %419, %423 : vector<2x32xf32>
    %425 = arith.index_cast %c5_i32 : i32 to index
    %c0_119 = arith.constant 0 : index
    %c0_120 = arith.constant 0 : index
    %426 = vector.load %arg14[%425, %c0_119, %c0_120] : memref<8x2x32xf32, #tpu.memory_space<vmem>>, vector<1x2x32xf32>
    %427 = vector.shape_cast %426 : vector<1x2x32xf32> to vector<2x32xf32>
    %428 = vector.shape_cast %394 : vector<2x32xf32> to vector<1x2x32xf32>
    tpu.vector_store %arg14[%425, %c0_119, %c0_120], %428 {strides = array<i32>} : memref<8x2x32xf32, #tpu.memory_space<vmem>>, vector<1x2x32xf32>,
    %429 = arith.index_cast %364 : i32 to index
    %c0_121 = arith.constant 0 : index
    %c0_122 = arith.constant 0 : index
    %430 = vector.load %arg15[%429, %c0_121, %c0_122] : memref<8x2x32xf32, #tpu.memory_space<vmem>>, vector<1x2x32xf32>
    %431 = vector.shape_cast %430 : vector<1x2x32xf32> to vector<2x32xf32>
    %432 = vector.shape_cast %424 : vector<2x32xf32> to vector<1x2x32xf32>
    tpu.vector_store %arg15[%429, %c0_121, %c0_122], %432 {strides = array<i32>} : memref<8x2x32xf32, #tpu.memory_space<vmem>>, vector<1x2x32xf32>,
    %c6_i32 = arith.constant 6 : i32
    %c7_i32_123 = arith.constant 7 : i32
    %433 = arith.subi %c7_i32_123, %c6_i32 : i32
    %434 = arith.index_cast %c6_i32 : i32 to index
    %c0_124 = arith.constant 0 : index
    %c0_125 = arith.constant 0 : index
    %435 = vector.load %arg12[%434, %c0_124, %c0_125] : memref<8x2x128xf32, #tpu.memory_space<vmem>>, vector<1x2x128xf32>
    %436 = vector.shape_cast %435 : vector<1x2x128xf32> to vector<2x128xf32>
    %cst_126 = arith.constant dense<0.000000e+00> : vector<2x128xf32>
    %437 = tpu.matmul %394, %16, %cst_126 {dimension_numbers = #tpu.dot_dimension_numbers<[1], [0], [0], [1], [0, 0, 1, 1], [], []>} : vector<2x32xf32>, vector<32x128xf32>, vector<2x128xf32> -> vector<2x128xf32>
    %438 = arith.addf %436, %437 : vector<2x128xf32>
    %439 = vector.extract_strided_slice %438 {offsets = [0, 0], sizes = [2, 32], strides = [1, 1]} : vector<2x128xf32> to vector<2x32xf32>
    %440 = arith.negf %439 : vector<2x32xf32>
    %441 = math.exp %440 : vector<2x32xf32>
    %cst_127 = arith.constant 1.000000e+00 : f32
    %442 = vector.broadcast %cst_127 : f32 to vector<2x32xf32>
    %443 = arith.addf %442, %441 : vector<2x32xf32>
    %444 = arith.divf %442, %443 : vector<2x32xf32>
    %445 = vector.extract_strided_slice %438 {offsets = [0, 32], sizes = [2, 32], strides = [1, 1]} : vector<2x128xf32> to vector<2x32xf32>
    %446 = arith.negf %445 : vector<2x32xf32>
    %447 = math.exp %446 : vector<2x32xf32>
    %cst_128 = arith.constant 1.000000e+00 : f32
    %448 = vector.broadcast %cst_128 : f32 to vector<2x32xf32>
    %449 = arith.addf %448, %447 : vector<2x32xf32>
    %450 = arith.divf %448, %449 : vector<2x32xf32>
    %451 = vector.extract_strided_slice %438 {offsets = [0, 64], sizes = [2, 32], strides = [1, 1]} : vector<2x128xf32> to vector<2x32xf32>
    %452 = math.tanh %451 : vector<2x32xf32>
    %453 = vector.extract_strided_slice %438 {offsets = [0, 96], sizes = [2, 32], strides = [1, 1]} : vector<2x128xf32> to vector<2x32xf32>
    %454 = arith.negf %453 : vector<2x32xf32>
    %455 = math.exp %454 : vector<2x32xf32>
    %cst_129 = arith.constant 1.000000e+00 : f32
    %456 = vector.broadcast %cst_129 : f32 to vector<2x32xf32>
    %457 = arith.addf %456, %455 : vector<2x32xf32>
    %458 = arith.divf %456, %457 : vector<2x32xf32>
    %459 = arith.mulf %450, %392 : vector<2x32xf32>
    %460 = arith.mulf %444, %452 : vector<2x32xf32>
    %461 = arith.addf %459, %460 : vector<2x32xf32>
    %462 = math.tanh %461 : vector<2x32xf32>
    %463 = arith.mulf %458, %462 : vector<2x32xf32>
    %464 = arith.index_cast %433 : i32 to index
    %c0_130 = arith.constant 0 : index
    %c0_131 = arith.constant 0 : index
    %465 = vector.load %arg13[%464, %c0_130, %c0_131] : memref<8x2x128xf32, #tpu.memory_space<vmem>>, vector<1x2x128xf32>
    %466 = vector.shape_cast %465 : vector<1x2x128xf32> to vector<2x128xf32>
    %cst_132 = arith.constant dense<0.000000e+00> : vector<2x128xf32>
    %467 = tpu.matmul %424, %17, %cst_132 {dimension_numbers = #tpu.dot_dimension_numbers<[1], [0], [0], [1], [0, 0, 1, 1], [], []>} : vector<2x32xf32>, vector<32x128xf32>, vector<2x128xf32> -> vector<2x128xf32>
    %468 = arith.addf %466, %467 : vector<2x128xf32>
    %469 = vector.extract_strided_slice %468 {offsets = [0, 0], sizes = [2, 32], strides = [1, 1]} : vector<2x128xf32> to vector<2x32xf32>
    %470 = arith.negf %469 : vector<2x32xf32>
    %471 = math.exp %470 : vector<2x32xf32>
    %cst_133 = arith.constant 1.000000e+00 : f32
    %472 = vector.broadcast %cst_133 : f32 to vector<2x32xf32>
    %473 = arith.addf %472, %471 : vector<2x32xf32>
    %474 = arith.divf %472, %473 : vector<2x32xf32>
    %475 = vector.extract_strided_slice %468 {offsets = [0, 32], sizes = [2, 32], strides = [1, 1]} : vector<2x128xf32> to vector<2x32xf32>
    %476 = arith.negf %475 : vector<2x32xf32>
    %477 = math.exp %476 : vector<2x32xf32>
    %cst_134 = arith.constant 1.000000e+00 : f32
    %478 = vector.broadcast %cst_134 : f32 to vector<2x32xf32>
    %479 = arith.addf %478, %477 : vector<2x32xf32>
    %480 = arith.divf %478, %479 : vector<2x32xf32>
    %481 = vector.extract_strided_slice %468 {offsets = [0, 64], sizes = [2, 32], strides = [1, 1]} : vector<2x128xf32> to vector<2x32xf32>
    %482 = math.tanh %481 : vector<2x32xf32>
    %483 = vector.extract_strided_slice %468 {offsets = [0, 96], sizes = [2, 32], strides = [1, 1]} : vector<2x128xf32> to vector<2x32xf32>
    %484 = arith.negf %483 : vector<2x32xf32>
    %485 = math.exp %484 : vector<2x32xf32>
    %cst_135 = arith.constant 1.000000e+00 : f32
    %486 = vector.broadcast %cst_135 : f32 to vector<2x32xf32>
    %487 = arith.addf %486, %485 : vector<2x32xf32>
    %488 = arith.divf %486, %487 : vector<2x32xf32>
    %489 = arith.mulf %480, %422 : vector<2x32xf32>
    %490 = arith.mulf %474, %482 : vector<2x32xf32>
    %491 = arith.addf %489, %490 : vector<2x32xf32>
    %492 = math.tanh %491 : vector<2x32xf32>
    %493 = arith.mulf %488, %492 : vector<2x32xf32>
    %494 = arith.index_cast %c6_i32 : i32 to index
    %c0_136 = arith.constant 0 : index
    %c0_137 = arith.constant 0 : index
    %495 = vector.load %arg14[%494, %c0_136, %c0_137] : memref<8x2x32xf32, #tpu.memory_space<vmem>>, vector<1x2x32xf32>
    %496 = vector.shape_cast %495 : vector<1x2x32xf32> to vector<2x32xf32>
    %497 = vector.shape_cast %463 : vector<2x32xf32> to vector<1x2x32xf32>
    tpu.vector_store %arg14[%494, %c0_136, %c0_137], %497 {strides = array<i32>} : memref<8x2x32xf32, #tpu.memory_space<vmem>>, vector<1x2x32xf32>,
    %498 = arith.index_cast %433 : i32 to index
    %c0_138 = arith.constant 0 : index
    %c0_139 = arith.constant 0 : index
    %499 = vector.load %arg15[%498, %c0_138, %c0_139] : memref<8x2x32xf32, #tpu.memory_space<vmem>>, vector<1x2x32xf32>
    %500 = vector.shape_cast %499 : vector<1x2x32xf32> to vector<2x32xf32>
    %501 = vector.shape_cast %493 : vector<2x32xf32> to vector<1x2x32xf32>
    tpu.vector_store %arg15[%498, %c0_138, %c0_139], %501 {strides = array<i32>} : memref<8x2x32xf32, #tpu.memory_space<vmem>>, vector<1x2x32xf32>,
    %c7_i32_140 = arith.constant 7 : i32
    %c7_i32_141 = arith.constant 7 : i32
    %502 = arith.subi %c7_i32_141, %c7_i32_140 : i32
    %503 = arith.index_cast %c7_i32_140 : i32 to index
    %c0_142 = arith.constant 0 : index
    %c0_143 = arith.constant 0 : index
    %504 = vector.load %arg12[%503, %c0_142, %c0_143] : memref<8x2x128xf32, #tpu.memory_space<vmem>>, vector<1x2x128xf32>
    %505 = vector.shape_cast %504 : vector<1x2x128xf32> to vector<2x128xf32>
    %cst_144 = arith.constant dense<0.000000e+00> : vector<2x128xf32>
    %506 = tpu.matmul %463, %16, %cst_144 {dimension_numbers = #tpu.dot_dimension_numbers<[1], [0], [0], [1], [0, 0, 1, 1], [], []>} : vector<2x32xf32>, vector<32x128xf32>, vector<2x128xf32> -> vector<2x128xf32>
    %507 = arith.addf %505, %506 : vector<2x128xf32>
    %508 = vector.extract_strided_slice %507 {offsets = [0, 0], sizes = [2, 32], strides = [1, 1]} : vector<2x128xf32> to vector<2x32xf32>
    %509 = arith.negf %508 : vector<2x32xf32>
    %510 = math.exp %509 : vector<2x32xf32>
    %cst_145 = arith.constant 1.000000e+00 : f32
    %511 = vector.broadcast %cst_145 : f32 to vector<2x32xf32>
    %512 = arith.addf %511, %510 : vector<2x32xf32>
    %513 = arith.divf %511, %512 : vector<2x32xf32>
    %514 = vector.extract_strided_slice %507 {offsets = [0, 32], sizes = [2, 32], strides = [1, 1]} : vector<2x128xf32> to vector<2x32xf32>
    %515 = arith.negf %514 : vector<2x32xf32>
    %516 = math.exp %515 : vector<2x32xf32>
    %cst_146 = arith.constant 1.000000e+00 : f32
    %517 = vector.broadcast %cst_146 : f32 to vector<2x32xf32>
    %518 = arith.addf %517, %516 : vector<2x32xf32>
    %519 = arith.divf %517, %518 : vector<2x32xf32>
    %520 = vector.extract_strided_slice %507 {offsets = [0, 64], sizes = [2, 32], strides = [1, 1]} : vector<2x128xf32> to vector<2x32xf32>
    %521 = math.tanh %520 : vector<2x32xf32>
    %522 = vector.extract_strided_slice %507 {offsets = [0, 96], sizes = [2, 32], strides = [1, 1]} : vector<2x128xf32> to vector<2x32xf32>
    %523 = arith.negf %522 : vector<2x32xf32>
    %524 = math.exp %523 : vector<2x32xf32>
    %cst_147 = arith.constant 1.000000e+00 : f32
    %525 = vector.broadcast %cst_147 : f32 to vector<2x32xf32>
    %526 = arith.addf %525, %524 : vector<2x32xf32>
    %527 = arith.divf %525, %526 : vector<2x32xf32>
    %528 = arith.mulf %519, %461 : vector<2x32xf32>
    %529 = arith.mulf %513, %521 : vector<2x32xf32>
    %530 = arith.addf %528, %529 : vector<2x32xf32>
    %531 = math.tanh %530 : vector<2x32xf32>
    %532 = arith.mulf %527, %531 : vector<2x32xf32>
    %533 = arith.index_cast %502 : i32 to index
    %c0_148 = arith.constant 0 : index
    %c0_149 = arith.constant 0 : index
    %534 = vector.load %arg13[%533, %c0_148, %c0_149] : memref<8x2x128xf32, #tpu.memory_space<vmem>>, vector<1x2x128xf32>
    %535 = vector.shape_cast %534 : vector<1x2x128xf32> to vector<2x128xf32>
    %cst_150 = arith.constant dense<0.000000e+00> : vector<2x128xf32>
    %536 = tpu.matmul %493, %17, %cst_150 {dimension_numbers = #tpu.dot_dimension_numbers<[1], [0], [0], [1], [0, 0, 1, 1], [], []>} : vector<2x32xf32>, vector<32x128xf32>, vector<2x128xf32> -> vector<2x128xf32>
    %537 = arith.addf %535, %536 : vector<2x128xf32>
    %538 = vector.extract_strided_slice %537 {offsets = [0, 0], sizes = [2, 32], strides = [1, 1]} : vector<2x128xf32> to vector<2x32xf32>
    %539 = arith.negf %538 : vector<2x32xf32>
    %540 = math.exp %539 : vector<2x32xf32>
    %cst_151 = arith.constant 1.000000e+00 : f32
    %541 = vector.broadcast %cst_151 : f32 to vector<2x32xf32>
    %542 = arith.addf %541, %540 : vector<2x32xf32>
    %543 = arith.divf %541, %542 : vector<2x32xf32>
    %544 = vector.extract_strided_slice %537 {offsets = [0, 32], sizes = [2, 32], strides = [1, 1]} : vector<2x128xf32> to vector<2x32xf32>
    %545 = arith.negf %544 : vector<2x32xf32>
    %546 = math.exp %545 : vector<2x32xf32>
    %cst_152 = arith.constant 1.000000e+00 : f32
    %547 = vector.broadcast %cst_152 : f32 to vector<2x32xf32>
    %548 = arith.addf %547, %546 : vector<2x32xf32>
    %549 = arith.divf %547, %548 : vector<2x32xf32>
    %550 = vector.extract_strided_slice %537 {offsets = [0, 64], sizes = [2, 32], strides = [1, 1]} : vector<2x128xf32> to vector<2x32xf32>
    %551 = math.tanh %550 : vector<2x32xf32>
    %552 = vector.extract_strided_slice %537 {offsets = [0, 96], sizes = [2, 32], strides = [1, 1]} : vector<2x128xf32> to vector<2x32xf32>
    %553 = arith.negf %552 : vector<2x32xf32>
    %554 = math.exp %553 : vector<2x32xf32>
    %cst_153 = arith.constant 1.000000e+00 : f32
    %555 = vector.broadcast %cst_153 : f32 to vector<2x32xf32>
    %556 = arith.addf %555, %554 : vector<2x32xf32>
    %557 = arith.divf %555, %556 : vector<2x32xf32>
    %558 = arith.mulf %549, %491 : vector<2x32xf32>
    %559 = arith.mulf %543, %551 : vector<2x32xf32>
    %560 = arith.addf %558, %559 : vector<2x32xf32>
    %561 = math.tanh %560 : vector<2x32xf32>
    %562 = arith.mulf %557, %561 : vector<2x32xf32>
    %563 = arith.index_cast %c7_i32_140 : i32 to index
    %c0_154 = arith.constant 0 : index
    %c0_155 = arith.constant 0 : index
    %564 = vector.load %arg14[%563, %c0_154, %c0_155] : memref<8x2x32xf32, #tpu.memory_space<vmem>>, vector<1x2x32xf32>
    %565 = vector.shape_cast %564 : vector<1x2x32xf32> to vector<2x32xf32>
    %566 = vector.shape_cast %532 : vector<2x32xf32> to vector<1x2x32xf32>
    tpu.vector_store %arg14[%563, %c0_154, %c0_155], %566 {strides = array<i32>} : memref<8x2x32xf32, #tpu.memory_space<vmem>>, vector<1x2x32xf32>,
    %567 = arith.index_cast %502 : i32 to index
    %c0_156 = arith.constant 0 : index
    %c0_157 = arith.constant 0 : index
    %568 = vector.load %arg15[%567, %c0_156, %c0_157] : memref<8x2x32xf32, #tpu.memory_space<vmem>>, vector<1x2x32xf32>
    %569 = vector.shape_cast %568 : vector<1x2x32xf32> to vector<2x32xf32>
    %570 = vector.shape_cast %562 : vector<2x32xf32> to vector<1x2x32xf32>
    tpu.vector_store %arg15[%567, %c0_156, %c0_157], %570 {strides = array<i32>} : memref<8x2x32xf32, #tpu.memory_space<vmem>>, vector<1x2x32xf32>,
    %c8_i32 = arith.constant 8 : i32
    %c0_158 = arith.constant 0 : index
    %c0_159 = arith.constant 0 : index
    %c0_160 = arith.constant 0 : index
    %571 = vector.load %arg14[%c0_158, %c0_159, %c0_160] : memref<8x2x32xf32, #tpu.memory_space<vmem>>, vector<8x2x32xf32>
    %572 = vector.shape_cast %571 : vector<8x2x32xf32> to vector<16x32xf32>
    %c0_161 = arith.constant 0 : index
    %c0_162 = arith.constant 0 : index
    %c0_163 = arith.constant 0 : index
    %573 = vector.load %arg15[%c0_161, %c0_162, %c0_163] : memref<8x2x32xf32, #tpu.memory_space<vmem>>, vector<8x2x32xf32>
    %574 = vector.shape_cast %573 : vector<8x2x32xf32> to vector<16x32xf32>
    %c0_164 = arith.constant 0 : index
    %c0_165 = arith.constant 0 : index
    %575 = vector.load %arg8[%c0_164, %c0_165] : memref<32x128xf32, #tpu.memory_space<vmem>>, vector<32x128xf32>
    %cst_166 = arith.constant dense<0.000000e+00> : vector<16x128xf32>
    %576 = tpu.matmul %572, %575, %cst_166 {dimension_numbers = #tpu.dot_dimension_numbers<[1], [0], [0], [1], [0, 0, 1, 1], [], []>} : vector<16x32xf32>, vector<32x128xf32>, vector<16x128xf32> -> vector<16x128xf32>
    %c0_167 = arith.constant 0 : index
    %c0_168 = arith.constant 0 : index
    %577 = vector.load %arg9[%c0_167, %c0_168] : memref<32x128xf32, #tpu.memory_space<vmem>>, vector<32x128xf32>
    %cst_169 = arith.constant dense<0.000000e+00> : vector<16x128xf32>
    %578 = tpu.matmul %574, %577, %cst_169 {dimension_numbers = #tpu.dot_dimension_numbers<[1], [0], [0], [1], [0, 0, 1, 1], [], []>} : vector<16x32xf32>, vector<32x128xf32>, vector<16x128xf32> -> vector<16x128xf32>
    %579 = arith.addf %576, %578 : vector<16x128xf32>
    %c0_170 = arith.constant 0 : index
    %c0_171 = arith.constant 0 : index
    %580 = vector.load %arg10[%c0_170, %c0_171] : memref<1x128xf32, #tpu.memory_space<vmem>>, vector<1x128xf32>
    %581 = vector.broadcast %580 : vector<1x128xf32> to vector<16x128xf32>
    %582 = arith.addf %579, %581 : vector<16x128xf32>
    %583 = vector.shape_cast %582 : vector<16x128xf32> to vector<8x2x128xf32>
    %c0_172 = arith.constant 0 : index
    %c0_173 = arith.constant 0 : index
    %c0_174 = arith.constant 0 : index
    %584 = vector.load %arg11[%c0_172, %c0_173, %c0_174] : memref<8x2x128xf32, #tpu.memory_space<vmem>>, vector<8x2x128xf32>
    tpu.vector_store %arg11[%c0_172, %c0_173, %c0_174], %583 {strides = array<i32>} : memref<8x2x128xf32, #tpu.memory_space<vmem>>, vector<8x2x128xf32>,
    return
  }
  func.func @transform_0(%arg0: i32) -> (i32, i32, i32) {
    %c0_i32 = arith.constant 0 : i32
    %c0_i32_0 = arith.constant 0 : i32
    %c0_i32_1 = arith.constant 0 : i32
    %c0_i32_2 = arith.constant 0 : i32
    return %c0_i32, %c0_i32_0, %c0_i32_1 : i32, i32, i32
  }
  func.func @transform_1(%arg0: i32) -> (i32, i32) {
    %c0_i32 = arith.constant 0 : i32
    %c0_i32_0 = arith.constant 0 : i32
    %c0_i32_1 = arith.constant 0 : i32
    return %c0_i32, %c0_i32_0 : i32, i32
  }
  func.func @transform_2(%arg0: i32) -> (i32, i32) {
    %c0_i32 = arith.constant 0 : i32
    %c0_i32_0 = arith.constant 0 : i32
    %c0_i32_1 = arith.constant 0 : i32
    return %c0_i32, %c0_i32_0 : i32, i32
  }
  func.func @transform_3(%arg0: i32) -> (i32, i32) {
    %c0_i32 = arith.constant 0 : i32
    %c0_i32_0 = arith.constant 0 : i32
    %c0_i32_1 = arith.constant 0 : i32
    return %c0_i32, %c0_i32_0 : i32, i32
  }
  func.func @transform_4(%arg0: i32) -> (i32, i32) {
    %c0_i32 = arith.constant 0 : i32
    %c0_i32_0 = arith.constant 0 : i32
    %c0_i32_1 = arith.constant 0 : i32
    return %c0_i32, %c0_i32_0 : i32, i32
  }
  func.func @transform_5(%arg0: i32) -> (i32, i32) {
    %c0_i32 = arith.constant 0 : i32
    %c0_i32_0 = arith.constant 0 : i32
    %c0_i32_1 = arith.constant 0 : i32
    return %c0_i32, %c0_i32_0 : i32, i32
  }
  func.func @transform_6(%arg0: i32) -> (i32, i32) {
    %c0_i32 = arith.constant 0 : i32
    %c0_i32_0 = arith.constant 0 : i32
    %c0_i32_1 = arith.constant 0 : i32
    return %c0_i32, %c0_i32_0 : i32, i32
  }
  func.func @transform_7(%arg0: i32) -> (i32, i32) {
    %c0_i32 = arith.constant 0 : i32
    %c0_i32_0 = arith.constant 0 : i32
    %c0_i32_1 = arith.constant 0 : i32
    return %c0_i32, %c0_i32_0 : i32, i32
  }
  func.func @transform_8(%arg0: i32) -> (i32, i32) {
    %c0_i32 = arith.constant 0 : i32
    %c0_i32_0 = arith.constant 0 : i32
    %c0_i32_1 = arith.constant 0 : i32
    return %c0_i32, %c0_i32_0 : i32, i32
  }
  func.func @transform_9(%arg0: i32) -> (i32, i32) {
    %c0_i32 = arith.constant 0 : i32
    %c0_i32_0 = arith.constant 0 : i32
    %c0_i32_1 = arith.constant 0 : i32
    return %c0_i32, %c0_i32_0 : i32, i32
  }
  func.func @transform_10(%arg0: i32) -> (i32, i32, i32) {
    %c0_i32 = arith.constant 0 : i32
    %c0_i32_0 = arith.constant 0 : i32
    %c0_i32_1 = arith.constant 0 : i32
    %c0_i32_2 = arith.constant 0 : i32
    return %c0_i32, %c0_i32_0, %c0_i32_1 : i32, i32, i32
  }
}

</mosaic_0001>

<bundles_post_ra>
// kernel: bidirectional_lstm_pallas.1
= control target key start
LH: loop header
LB: loop body
LE: loop exit
PB: predicated region body
PF: predicated region fallthrough
CT: control target
= control target key end

     0   :  { %vm76_vm0 = vcmask 261120   ;;  %v1632_v26 = vmov 0.0   ;;  %vm334_vm9 = vcmask 254976   ;;  %s2064_s1 = inlined_call_operand.vmem [shape: f32[32,128], index: 1, kind: input, shape index: {}]   ;;  %s2065_s2 = inlined_call_operand.vmem [shape: f32[32,128], index: 2, kind: input, shape index: {}]   ;;  %s2066_s0 = inlined_call_operand.vmem [shape: f32[8,2,32], index: 0, kind: input, shape index: {}]   ;;  %s2067_s3 = inlined_call_operand.vmem [shape: f32[32,128], index: 3, kind: input, shape index: {}]   ;;  %s2068_s4 = inlined_call_operand.vmem [shape: f32[32,128], index: 4, kind: input, shape index: {}]   ;;  %s2069_s5 = inlined_call_operand.vmem [shape: f32[1,128], index: 5, kind: input, shape index: {}]   ;;  %s2070_s6 = inlined_call_operand.vmem [shape: f32[1,128], index: 6, kind: input, shape index: {}]   ;;  %s2071_s8 = inlined_call_operand.vmem [shape: f32[32,128], index: 8, kind: input, shape index: {}]   ;;  %s2072_s7 = inlined_call_operand.vmem [shape: f32[32,128], index: 7, kind: input, shape index: {}]   ;;  %s2073_s9 = inlined_call_operand.vmem [shape: f32[1,128], index: 9, kind: input, shape index: {}]   ;;  %s2074_s10 = inlined_call_operand.vmem [shape: f32[8,2,128], index: 10, kind: output, shape index: {}]  }
   0x1   :  { %v46_v0 = vld [vmem:[%s2064_s1 + $0x18] sm:$0xff]  ;;  %v45_v2 = vld [vmem:[%s2064_s1 + $0x10] sm:$0xff]  ;;  %v44_v4 = vld [vmem:[%s2064_s1 + $0x8] sm:$0xff] }
   0x2   :  { %v129_v1 = vld [vmem:[%s2065_s2 + $0x18] sm:$0xff]  ;;  %1490 = vmatpush.msra.mxu2 %v46_v0  ;;  %v128_v3 = vld [vmem:[%s2065_s2 + $0x10] sm:$0xff]  ;;  %93 = vmatpush.msra.mxu0 %v46_v0  ;;  %v127_v5 = vld [vmem:[%s2065_s2 + $0x8] sm:$0xff] }
   0x3   :  { %1494 = vmatpush.msra.mxu3 %v129_v1  ;;  %v39_v6 = vld [vmem:[%s2066_s0 + $0x8] sm:$0x3]  ;;  %v40_v7 = vld [vmem:[%s2066_s0 + $0xa] sm:$0x3]  ;;  %167 = vmatpush.msra.mxu1 %v129_v1  ;;  %v41_v8 = vld [vmem:[%s2066_s0 + $0xc] sm:$0x3] }
   0x4   :  { %1491 = vmatpush.msra.mxu2 %v45_v2  ;;  %v42_v9 = vld [vmem:[%s2066_s0 + $0xe] sm:$0x3]  ;;  %67 = vst [vmem:[#allocation1 + $0x20] ss:$4 sm:$0xff] %v39_v6  ;;  %94 = vmatpush.msra.mxu0 %v45_v2  ;;  %v43_v10 = vld [vmem:[%s2064_s1] sm:$0xff]  ;;  %v1729_v12 = vld [vmem:[%s2067_s3 + $0x18] sm:$0xff] }
   0x5   :  { %1495 = vmatpush.msra.mxu3 %v128_v3  ;;  %69 = vst [vmem:[#allocation1 + $0x21] ss:$4 sm:$0xff] %v40_v7  ;;  %v126_v11 = vld [vmem:[%s2065_s2] sm:$0xff]  ;;  %168 = vmatpush.msra.mxu1 %v128_v3  ;;  %v1743_v16 = vld [vmem:[%s2067_s3 + $0x10] sm:$0xff]  ;;  %v1751_v18 = vld [vmem:[%s2068_s4 + $0x18] sm:$0xff] }
   0x6   :  { %1492 = vmatpush.msra.mxu2 %v44_v4  ;;  %71 = vst [vmem:[#allocation1 + $0x22] ss:$4 sm:$0xff] %v41_v8  ;;  %v35_v13 = vld [vmem:[%s2066_s0] sm:$0x3]  ;;  %v36_v14 = vld [vmem:[%s2066_s0 + $0x2] sm:$0x3]  ;;  %95 = vmatpush.msra.mxu0 %v44_v4 }
   0x7   :  { %1496 = vmatpush.msra.mxu3 %v127_v5  ;;  %73 = vst [vmem:[#allocation1 + $0x23] ss:$4 sm:$0xff] %v42_v9  ;;  %v37_v15 = vld [vmem:[%s2066_s0 + $0x4] sm:$0x3]  ;;  %169 = vmatpush.msra.mxu1 %v127_v5  ;;  %v38_v17 = vld [vmem:[%s2066_s0 + $0x6] sm:$0x3] }
   0x8   :  { %1493 = vmatpush.msra.mxu2 %v43_v10  ;;  %59 = vst [vmem:[#allocation1] ss:$4 sm:$0xff] %v35_v13  ;;  %96 = vmatpush.msra.mxu0 %v43_v10  ;;  %v1757_v19 = vld [vmem:[%s2068_s4 + $0x10] sm:$0xff]  ;;  %v1762_v20 = vld [vmem:[%s2067_s3 + $0x8] sm:$0xff]  ;;  %v1778_v22 = vld [vmem:[%s2067_s3] sm:$0xff] }
   0x9   :  { %1497 = vmatpush.msra.mxu3 %v126_v11  ;;  %61 = vst [vmem:[#allocation1 + $0x1] ss:$4 sm:$0xff] %v36_v14  ;;  %170 = vmatpush.msra.mxu1 %v126_v11  ;;  %v1769_v21 = vld [vmem:[%s2068_s4 + $0x8] sm:$0xff]  ;;  %v1783_v23 = vld [vmem:[%s2068_s4] sm:$0xff] }
   0xa   :  { %224 = vmatpush.msrb.mxu2 %v1729_v12  ;;  %63 = vst [vmem:[#allocation1 + $0x2] ss:$4 sm:$0xff] %v37_v15  ;;  %494 = vmatpush.msrb.mxu0 %v1729_v12  ;;  %v1501_v28 = vld [vmem:[%s2069_s5] ss:$0 sm:$0xff]  ;;  %s1633_s5 = smov 64  }
   0xb   :  { %284 = vmatpush.msrb.mxu3 %v1751_v18  ;;  %65 = vst [vmem:[#allocation1 + $0x3] ss:$4 sm:$0xff] %v38_v17  ;;  %556 = vmatpush.msrb.mxu1 %v1751_v18  ;;  %v1823_v39 = vld [vmem:[%s2070_s6] ss:$0 sm:$0xff]  ;;  %s1634_s6 = smov 32  }
   0xc   :  { %225 = vmatpush.msrb.mxu2 %v1743_v16  ;;  %495 = vmatpush.msrb.mxu0 %v1743_v16 }
   0xd   :  { %285 = vmatpush.msrb.mxu3 %v1757_v19  ;;  %557 = vmatpush.msrb.mxu1 %v1757_v19 }
   0xe   :  { %226 = vmatpush.msrb.mxu2 %v1762_v20  ;;  %v75_v24 = vld.sshfl [vmem:[#allocation1 + $0x20] sm:$0xff pattern:$0x73625140]  ;;  %496 = vmatpush.msrb.mxu0 %v1762_v20 }
   0xf   :  { %286 = vmatpush.msrb.mxu3 %v1769_v21  ;;  %1453 = vmatmul.msk.f32.vlgmr.msra.gmra.mxu2 %vm76_vm0, %v75_v24  ;;  %142 = vst [vmem:[#allocation1 + $0x20] ss:$4 sm:$0xff] %v39_v6 }
  0x10   :  { %558 = vmatpush.msrb.mxu1 %v1769_v21  ;;  %144 = vst [vmem:[#allocation1 + $0x21] ss:$4 sm:$0xff] %v40_v7  ;;  %227 = vmatpush.msrb.mxu2 %v1778_v22 }
  0x11   :  { %287 = vmatpush.msrb.mxu3 %v1783_v23  ;;  %146 = vst [vmem:[#allocation1 + $0x22] ss:$4 sm:$0xff] %v41_v8  ;;  %497 = vmatpush.msrb.mxu0 %v1778_v22 }
  0x12   :  { %358 = vmatpush.msra.mxu2 %v1729_v12  ;;  %559 = vmatpush.msrb.mxu1 %v1783_v23  ;;  %148 = vst [vmem:[#allocation1 + $0x23] ss:$4 sm:$0xff] %v42_v9  ;;  %v74_v25 = vld.sshfl [vmem:[#allocation1] sm:$0xff pattern:$0x73625140] }
  0x13   :  { %1452 = vmatmul.msk.f32.vlgmr.msra.gmra.mxu0 %vm76_vm0, %v74_v25  ;;  %134 = vst [vmem:[#allocation1] ss:$4 sm:$0xff] %v35_v13 }
  0x14   :  { %359 = vmatpush.msra.mxu2 %v1743_v16  ;;  %136 = vst [vmem:[#allocation1 + $0x1] ss:$4 sm:$0xff] %v36_v14  ;;  %766 = vmatpush.msra.mxu0 %v1729_v12 }
  0x15   :  { %138 = vst [vmem:[#allocation1 + $0x2] ss:$4 sm:$0xff] %v37_v15 }
  0x16   :  { %360 = vmatpush.msra.mxu2 %v1762_v20  ;;  %140 = vst [vmem:[#allocation1 + $0x3] ss:$4 sm:$0xff] %v38_v17  ;;  %767 = vmatpush.msra.mxu0 %v1743_v16 }
  0x17   :  { %228 = vmatmul.f32.vlgmr.msrb.gmra.mxu2 %v1632_v26 }
  0x18   :  { %361 = vmatpush.msra.mxu2 %v1778_v22  ;;  %768 = vmatpush.msra.mxu0 %v1762_v20 }
  0x19   :  { %v150_v27 = vld.sshfl [vmem:[#allocation1 + $0x20] sm:$0xff pattern:$0x73625140] }
  0x1a   :  { %630 = vmatpush.msrb.mxu2 %v1729_v12  ;;  %1455 = vmatmul.msk.f32.vlgmr.msra.gmra.mxu3 %vm76_vm0, %v150_v27 }
  0x1b   :  { %420 = vmatpush.msra.mxu3 %v1751_v18  ;;  %769 = vmatpush.msra.mxu0 %v1778_v22 }
  0x1c   :  { %631 = vmatpush.msrb.mxu2 %v1743_v16 }
  0x1d   :  { %421 = vmatpush.msra.mxu3 %v1757_v19 }
  0x1e   :  { %632 = vmatpush.msrb.mxu2 %v1762_v20 }
  0x1f   :  { %422 = vmatpush.msra.mxu3 %v1769_v21 }
  0x20   :  { %633 = vmatpush.msrb.mxu2 %v1778_v22 }
  0x21   :  { %423 = vmatpush.msra.mxu3 %v1783_v23 }
  0x22   :  { %288 = vmatmul.f32.vlgmr.msrb.gmra.mxu3 %v1632_v26 }
  0x23   :  { %692 = vmatpush.msrb.mxu3 %v1751_v18 }
  0x25   :  { %693 = vmatpush.msrb.mxu3 %v1757_v19 }
  0x27   :  { %694 = vmatpush.msrb.mxu3 %v1769_v21 }
  0x29   :  { %695 = vmatpush.msrb.mxu3 %v1783_v23 }
  0x90   :  { %v98_v29 = vpop.f32.mrf.mxu0 }
  0x91   :  { %v99_v30 = vadd.f32 %v1501_v28, %v98_v29 }
  0x92   :  { %v101_v31 = vpop.f32.mrf.mxu2 }
  0x93   :  { %v106_v32 = vrot.slane %v99_v30, 2  ;;  %v107_v33 = vrot.slane %v99_v30, 4  ;;  %v108_v34 = vrot.slane %v99_v30, 6  ;;  %118 = vst [vmem:[#allocation2] sm:$0x3] %v99_v30  ;;  %v102_v35 = vadd.f32 %v1501_v28, %v101_v31 }
  0x95   :  { %119 = vst [vmem:[#allocation2 + $0x2] sm:$0x3] %v106_v32  ;;  %v109_v36 = vrot.slane %v102_v35, 2  ;;  %v110_v37 = vrot.slane %v102_v35, 4  ;;  %v111_v38 = vrot.slane %v102_v35, 6 }
  0x96   :  { %120 = vst [vmem:[#allocation2 + $0x4] sm:$0x3] %v107_v33 }
  0x97   :  { %121 = vst [vmem:[#allocation2 + $0x6] sm:$0x3] %v108_v34 }
  0x98   :  { %122 = vst [vmem:[#allocation2 + $0x8] sm:$0x3] %v102_v35 }
  0x99   :  { %123 = vst [vmem:[#allocation2 + $0xa] sm:$0x3] %v109_v36 }
  0x9a   :  { %124 = vst [vmem:[#allocation2 + $0xc] sm:$0x3] %v110_v37  ;;  %v208_v48 = vld [vmem:[#allocation2] sm:$0x3]  ;;  %v229_v49 = vpop.f32.mrf.mxu2 }
  0x9b   :  { %125 = vst [vmem:[#allocation2 + $0xe] sm:$0x3] %v111_v38  ;;  %v232_v50 = vadd.f32 %v229_v49, %v208_v48 }
  0x9d   :  { %v175_v40 = vpop.f32.mrf.mxu3  ;;  %v1456_v54 = vmul.f32 -1.442695, %v232_v50 }
  0x9e   :  { %v176_v41 = vadd.f32 %v1823_v39, %v175_v40 }
  0xa0   :  { %v183_v42 = vrot.slane %v176_v41, 2  ;;  %v184_v43 = vrot.slane %v176_v41, 4  ;;  %v185_v44 = vrot.slane %v176_v41, 6  ;;  %196 = vst [vmem:[#allocation3 + $0x8] sm:$0x3] %v176_v41 }
  0xa2   :  { %197 = vst [vmem:[#allocation3 + $0xa] sm:$0x3] %v183_v42 }
  0xa3   :  { %198 = vst [vmem:[#allocation3 + $0xc] sm:$0x3] %v184_v43 }
  0xa4   :  { %199 = vst [vmem:[#allocation3 + $0xe] sm:$0x3] %v185_v44 }
  0xa5   :  { %v289_v45 = vpop.f32.mrf.mxu3 }
  0xaa   :  { %v405_v43 = vld [vmem:[#allocation3 + $0xc] sm:$0x3] }
  0xab   :  { %v271_v46 = vld [vmem:[#allocation3 + $0xe] sm:$0x3] }
  0xac   :  { %v292_v47 = vadd.f32 %v289_v45, %v271_v46  ;;  %v343_v46 = vld [vmem:[#allocation2 + $0x2] sm:$0x3] }
  0xae   :  { %1504 = vtanh.f32 %v292_v47  ;;  %v1457_v53 = vmul.f32 -1.442695, %v292_v47 }
  0xaf   :  { %1506 = vtanh.f32 %v232_v50 }
  0xb0   :  { %1508 = vpow2.f32 %v1457_v53 }
  0xb1   :  { %1510 = vpow2.f32 %v1456_v54 }
  0xb4   :  { %v1505_v51 = vpop.eup %1504 }
  0xb5   :  { %315 = vrot.lane.b32.xlu0 %v1505_v51, %s1633_s5  ;;  %v1507_v52 = vpop.eup %1506 }
  0xb6   :  { %v1509_v55 = vpop.eup %1508 }
  0xb7   :  { %v296_v56 = vadd.f32 1.0, %v1509_v55  ;;  %v1511_v57 = vpop.eup %1510 }
  0xb8   :  { %v236_v58 = vadd.f32 1.0, %v1511_v57 }
  0xb9   :  { %1512 = vrcp.f32 %v296_v56  ;;  %v308_v3 = vand.u32 2147483648, %v296_v56  ;;  %vm302_vm2 = vweird.f32 %v296_v56  ;;  %v306_v4 = vand.u32 2147483647, %v296_v56 }
  0xba   :  { %1514 = vrcp.f32 %v236_v58  ;;  %vm242_vm5 = vweird.f32 %v236_v58  ;;  %v248_v10 = vand.u32 2147483648, %v236_v58  ;;  %v246_v14 = vand.u32 2147483647, %v236_v58 }
  0xbb   :  { %v309_v7 = vor.u32 1.1754944e-38, %v308_v3  ;;  %vm307_vm4 = vcmp.eq.f32.partialorder %v306_v4, 8.507059e+37 }
  0xbc   :  { %v249_v15 = vor.u32 1.1754944e-38, %v248_v10  ;;  %vm247_vm8 = vcmp.eq.f32.partialorder %v246_v14, 8.507059e+37 }
  0xbd   :  { %255 = vrot.lane.b32.xlu0 %v1507_v52, %s1633_s5 }
  0xbf   :  { %v1513_v59 = vpop.eup %1512 }
  0xc0   :  { %v298_v60 = vmul.f32 %v1513_v59, %v296_v56  ;;  %v1515_v62 = vpop.eup %1514  ;;  %vm303_vm1 = vweird.f32 %v1513_v59 }
  0xc1   :  { %v238_v0 = vmul.f32 %v1515_v62, %v236_v58  ;;  %vm304_vm3 = vmor %vm302_vm2, %vm303_vm1  ;;  %vm243_vm6 = vweird.f32 %v1515_v62 }
  0xc2   :  { %v299_v61 = vsub.f32 1.0, %v298_v60  ;;  %vm244_vm7 = vmor %vm242_vm5, %vm243_vm6 }
  0xc3   :  { %v239_v2 = vsub.f32 1.0, %v238_v0 }
  0xc4   :  { %v300_v63 = vmul.f32 %v1513_v59, %v299_v61 }
  0xc5   :  { %v240_v6 = vmul.f32 %v1515_v62, %v239_v2 }
  0xc6   :  { %v301_v1 = vadd.f32 %v1513_v59, %v300_v63 }
  0xc7   :  { %v241_v13 = vadd.f32 %v1515_v62, %v240_v6 }
  0xc8   :  { %v305_v5 = vsel %vm304_vm3, %v1513_v59, %v301_v1 }
  0xc9   :  { %v310_v9 = vsel %vm307_vm4, %v309_v7, %v305_v5  ;;  %v245_v17 = vsel %vm244_vm7, %v1515_v62, %v241_v13 }
  0xca   :  { %v250_v25 = vsel %vm247_vm8, %v249_v15, %v245_v17  ;;  %v313_v27 = vmul.f32 0.0, %v310_v9 }
  0xcb   :  { %v253_v30 = vmul.f32 0.0, %v250_v25 }
 0x127   :  { %v316_v8 = vpop.permute.xlu0 %315 }
 0x128   :  { %v318_v11 = vmul.f32 %v316_v8, %v310_v9 }
 0x12a   :  { %320 = vrot.lane.b32.xlu1 %v318_v11, %s1634_s6 }
 0x12f   :  { %v256_v24 = vpop.permute.xlu0 %255 }
 0x130   :  { %v258_v26 = vmul.f32 %v256_v24, %v250_v25 }
 0x132   :  { %260 = vrot.lane.b32.xlu1 %v258_v26, %s1634_s6 }
 0x19c   :  { %v321_v28 = vpop.permute.xlu1 %320 }
 0x19d   :  { %v1830_v29 = vadd.f32 %v321_v28, %v313_v27 }
 0x19f   :  { %1516 = vtanh.f32 %v1830_v29 }
 0x1a4   :  { %v261_v31 = vpop.permute.xlu1 %260 }
 0x1a5   :  { %v1517_v32 = vpop.eup %1516  ;;  %v1833_v33 = vadd.f32 %v261_v31, %v253_v30 }
 0x1a6   :  { %326 = vrot.lane.b32.xlu2 %v1517_v32, %s1633_s5 }
 0x1a7   :  { %1518 = vtanh.f32 %v1833_v33 }
 0x1ad   :  { %v1519_v34 = vpop.eup %1518 }
 0x1ae   :  { %266 = vrot.lane.b32.xlu2 %v1519_v34, %s1633_s5 }
 0x200   :  { %v327_v35 = vpop.permute.xlu2 %326 }
 0x201   :  { %v329_v36 = vmul.f32 %v327_v35, %v310_v9  ;;  %v149_v35 = vld.sshfl [vmem:[#allocation1] sm:$0xff pattern:$0x73625140] }
 0x202   :  { %1454 = vmatmul.msk.f32.vlgmr.msra.gmra.mxu1 %vm76_vm0, %v149_v35 }
 0x203   :  { %337 = vrot.lane.b32.xlu0 %v329_v36, %s1634_s6  ;;  %828 = vmatpush.msra.mxu1 %v1751_v18 }
 0x205   :  { %829 = vmatpush.msra.mxu1 %v1757_v19 }
 0x207   :  { %830 = vmatpush.msra.mxu1 %v1769_v21 }
 0x208   :  { %v267_v37 = vpop.permute.xlu2 %266 }
 0x209   :  { %v269_v38 = vmul.f32 %v267_v37, %v250_v25  ;;  %831 = vmatpush.msra.mxu1 %v1783_v23 }
 0x20b   :  { %331 = vrot.lane.b32.xlu1 %v269_v38, %s1634_s6 }
 0x275   :  { %v338_v40 = vpop.permute.xlu0 %337 }
 0x276   :  { %341 = vst.msk [vmem:[#allocation5 + $0xe] sm:$0x3] %vm334_vm9, %v338_v40  ;;  %1460 = vmatmul.msk.f32.vlgmr.msra.gmra.mxu3 %vm76_vm0, %v338_v40 }
 0x277   :  { %964 = vmatpush.msra.mxu3 %v1751_v18 }
 0x279   :  { %965 = vmatpush.msra.mxu3 %v1757_v19 }
 0x27b   :  { %966 = vmatpush.msra.mxu3 %v1769_v21 }
 0x27d   :  { %v1307_v41 = vld [vmem:[#allocation5 + $0xe] sm:$0x3]  ;;  %v332_v42 = vpop.permute.xlu1 %331  ;;  %967 = vmatpush.msra.mxu3 %v1783_v23 }
 0x27e   :  { %1338 = vst [vmem:[#allocation1 + $0x23] ss:$4 sm:$0xff] %v1307_v41  ;;  %1458 = vmatmul.msk.f32.vlgmr.msra.gmra.mxu2 %vm76_vm0, %v332_v42 }
 0x27f   :  { %335 = vst.msk [vmem:[#allocation4] sm:$0x3] %vm334_vm9, %v332_v42  ;;  %902 = vmatpush.msra.mxu2 %v1729_v12  ;;  %v172_v41 = vpop.f32.mrf.mxu1 }
 0x280   :  { %v173_v42 = vadd.f32 %v1823_v39, %v172_v41  ;;  %v541_v39 = vld [vmem:[#allocation3 + $0xa] sm:$0x3] }
 0x281   :  { %903 = vmatpush.msra.mxu2 %v1743_v16 }
 0x282   :  { %192 = vst [vmem:[#allocation3] sm:$0x3] %v173_v42 }
 0x283   :  { %904 = vmatpush.msra.mxu2 %v1762_v20 }
 0x285   :  { %905 = vmatpush.msra.mxu2 %v1778_v22 }
 0x2f9   :  { %v425_v44 = vpop.f32.mrf.mxu3 }
 0x2fa   :  { %v428_v45 = vadd.f32 %v425_v44, %v405_v43  ;;  %v180_v43 = vrot.slane %v173_v42, 2  ;;  %v181_v44 = vrot.slane %v173_v42, 4 }
 0x2fc   :  { %1520 = vtanh.f32 %v428_v45  ;;  %v1461_v51 = vmul.f32 -1.442695, %v428_v45  ;;  %v182_v45 = vrot.slane %v173_v42, 6  ;;  %193 = vst [vmem:[#allocation3 + $0x2] sm:$0x3] %v180_v43 }
 0x2fd   :  { %194 = vst [vmem:[#allocation3 + $0x4] sm:$0x3] %v181_v44  ;;  %v615_v44 = vld [vmem:[#allocation2 + $0x6] sm:$0x3] }
 0x2fe   :  { %195 = vst [vmem:[#allocation3 + $0x6] sm:$0x3] %v182_v45 }
 0x301   :  { %v363_v47 = vpop.f32.mrf.mxu2 }
 0x302   :  { %v1521_v48 = vpop.eup %1520  ;;  %v366_v49 = vadd.f32 %v363_v47, %v343_v46 }
 0x303   :  { %451 = vrot.lane.b32.xlu2 %v1521_v48, %s1633_s5 }
 0x304   :  { %1522 = vtanh.f32 %v366_v49  ;;  %v1459_v57 = vmul.f32 -1.442695, %v366_v49 }
 0x305   :  { %1524 = vpow2.f32 %v1461_v51 }
 0x30a   :  { %v1523_v50 = vpop.eup %1522 }
 0x30b   :  { %389 = vrot.lane.b32.xlu0 %v1523_v50, %s1633_s5  ;;  %v1525_v52 = vpop.eup %1524  ;;  %v479_v50 = vld [vmem:[#allocation2 + $0x4] sm:$0x3] }
 0x30c   :  { %v432_v53 = vadd.f32 1.0, %v1525_v52 }
 0x30e   :  { %1526 = vrcp.f32 %v432_v53  ;;  %v444_v60 = vand.u32 2147483648, %v432_v53  ;;  %vm438_vm11 = vweird.f32 %v432_v53  ;;  %v442_v61 = vand.u32 2147483647, %v432_v53 }
 0x30f   :  { %1528 = vpow2.f32 %v1459_v57 }
 0x310   :  { %v445_v0 = vor.u32 1.1754944e-38, %v444_v60  ;;  %vm443_vm13 = vcmp.eq.f32.partialorder %v442_v61, 8.507059e+37 }
 0x314   :  { %v1527_v54 = vpop.eup %1526 }
 0x315   :  { %v434_v55 = vmul.f32 %v1527_v54, %v432_v53  ;;  %vm439_vm10 = vweird.f32 %v1527_v54  ;;  %v1529_v62 = vpop.eup %1528 }
 0x316   :  { %vm440_vm12 = vmor %vm438_vm11, %vm439_vm10  ;;  %v370_v1 = vadd.f32 1.0, %v1529_v62 }
 0x317   :  { %v435_v56 = vsub.f32 1.0, %v434_v55 }
 0x318   :  { %1530 = vrcp.f32 %v370_v1  ;;  %v382_v10 = vand.u32 2147483648, %v370_v1  ;;  %vm376_vm15 = vweird.f32 %v370_v1  ;;  %v380_v11 = vand.u32 2147483647, %v370_v1 }
 0x319   :  { %v436_v58 = vmul.f32 %v1527_v54, %v435_v56 }
 0x31a   :  { %v383_v14 = vor.u32 1.1754944e-38, %v382_v10  ;;  %vm381_vm2 = vcmp.eq.f32.partialorder %v380_v11, 8.507059e+37 }
 0x31b   :  { %v437_v59 = vadd.f32 %v1527_v54, %v436_v58 }
 0x31d   :  { %v441_v63 = vsel %vm440_vm12, %v1527_v54, %v437_v59 }
 0x31e   :  { %v446_v2 = vsel %vm443_vm13, %v445_v0, %v441_v63  ;;  %v1531_v5 = vpop.eup %1530 }
 0x31f   :  { %v372_v6 = vmul.f32 %v1531_v5, %v370_v1  ;;  %vm377_vm14 = vweird.f32 %v1531_v5  ;;  %v449_v25 = vmul.f32 %v446_v2, %v1830_v29 }
 0x320   :  { %vm378_vm1 = vmor %vm376_vm15, %vm377_vm14 }
 0x321   :  { %v373_v7 = vsub.f32 1.0, %v372_v6 }
 0x323   :  { %v374_v8 = vmul.f32 %v1531_v5, %v373_v7 }
 0x325   :  { %v375_v9 = vadd.f32 %v1531_v5, %v374_v8 }
 0x327   :  { %v379_v13 = vsel %vm378_vm1, %v1531_v5, %v375_v9 }
 0x328   :  { %v384_v17 = vsel %vm381_vm2, %v383_v14, %v379_v13 }
 0x329   :  { %v387_v28 = vmul.f32 %v384_v17, %v1833_v33 }
 0x35d   :  { %v452_v3 = vpop.permute.xlu2 %451 }
 0x35e   :  { %v454_v4 = vmul.f32 %v452_v3, %v446_v2 }
 0x360   :  { %456 = vrot.lane.b32.xlu1 %v454_v4, %s1634_s6 }
 0x37d   :  { %v390_v15 = vpop.permute.xlu0 %389 }
 0x37e   :  { %v392_v24 = vmul.f32 %v390_v15, %v384_v17 }
 0x380   :  { %394 = vrot.lane.b32.xlu2 %v392_v24, %s1634_s6 }
 0x3d2   :  { %v457_v26 = vpop.permute.xlu1 %456 }
 0x3d3   :  { %v1857_v27 = vadd.f32 %v457_v26, %v449_v25 }
 0x3d5   :  { %1532 = vtanh.f32 %v1857_v27 }
 0x3da   :  { %v395_v30 = vpop.permute.xlu2 %394 }
 0x3db   :  { %v1533_v31 = vpop.eup %1532  ;;  %v1861_v32 = vadd.f32 %v395_v30, %v387_v28 }
 0x3dc   :  { %462 = vrot.lane.b32.xlu0 %v1533_v31, %s1633_s5 }
 0x3dd   :  { %1534 = vtanh.f32 %v1861_v32 }
 0x3e3   :  { %v1535_v34 = vpop.eup %1534 }
 0x3e4   :  { %400 = vrot.lane.b32.xlu1 %v1535_v34, %s1633_s5 }
 0x44e   :  { %v463_v29 = vpop.permute.xlu0 %462 }
 0x44f   :  { %v465_v33 = vmul.f32 %v463_v29, %v446_v2 }
 0x451   :  { %473 = vrot.lane.b32.xlu2 %v465_v33, %s1634_s6 }
 0x456   :  { %v401_v36 = vpop.permute.xlu1 %400 }
 0x457   :  { %v403_v37 = vmul.f32 %v401_v36, %v384_v17 }
 0x459   :  { %467 = vrot.lane.b32.xlu0 %v403_v37, %s1634_s6 }
 0x4ab   :  { %v474_v38 = vpop.permute.xlu2 %473 }
 0x4ac   :  { %477 = vst.msk [vmem:[#allocation5 + $0xc] sm:$0x3] %vm334_vm9, %v474_v38  ;;  %1464 = vmatmul.msk.f32.vlgmr.msrb.gmra.mxu1 %vm76_vm0, %v474_v38 }
 0x4ad   :  { %1100 = vmatpush.msrb.mxu1 %v1751_v18 }
 0x4af   :  { %1101 = vmatpush.msrb.mxu1 %v1757_v19 }
 0x4b1   :  { %1102 = vmatpush.msrb.mxu1 %v1769_v21 }
 0x4b3   :  { %1103 = vmatpush.msrb.mxu1 %v1783_v23  ;;  %v1306_v40 = vld [vmem:[#allocation5 + $0xc] sm:$0x3] }
 0x4b4   :  { %1336 = vst [vmem:[#allocation1 + $0x22] ss:$4 sm:$0xff] %v1306_v40 }
 0x4cb   :  { %v468_v46 = vpop.permute.xlu0 %467 }
 0x4cc   :  { %471 = vst.msk [vmem:[#allocation4 + $0x2] sm:$0x3] %vm334_vm9, %v468_v46  ;;  %1462 = vmatmul.msk.f32.vlgmr.msrb.gmra.mxu0 %vm76_vm0, %v468_v46 }
 0x4cd   :  { %1038 = vmatpush.msrb.mxu0 %v1729_v12 }
 0x4cf   :  { %1039 = vmatpush.msrb.mxu0 %v1743_v16 }
 0x4d1   :  { %1040 = vmatpush.msrb.mxu0 %v1762_v20 }
 0x4d3   :  { %1041 = vmatpush.msrb.mxu0 %v1778_v22 }
 0x529   :  { %v561_v47 = vpop.f32.mrf.mxu1 }
 0x52a   :  { %v564_v48 = vadd.f32 %v561_v47, %v541_v39 }
 0x52c   :  { %1536 = vtanh.f32 %v564_v48  ;;  %v1465_v54 = vmul.f32 -1.442695, %v564_v48 }
 0x532   :  { %v1537_v49 = vpop.eup %1536 }
 0x533   :  { %587 = vrot.lane.b32.xlu1 %v1537_v49, %s1633_s5 }
 0x549   :  { %v499_v51 = vpop.f32.mrf.mxu0 }
 0x54a   :  { %v502_v52 = vadd.f32 %v499_v51, %v479_v50 }
 0x54c   :  { %1538 = vtanh.f32 %v502_v52  ;;  %v1463_v55 = vmul.f32 -1.442695, %v502_v52 }
 0x54d   :  { %1540 = vpow2.f32 %v1465_v54 }
 0x54e   :  { %1542 = vpow2.f32 %v1463_v55 }
 0x552   :  { %v1539_v53 = vpop.eup %1538 }
 0x553   :  { %525 = vrot.lane.b32.xlu2 %v1539_v53, %s1633_s5  ;;  %v1541_v56 = vpop.eup %1540 }
 0x554   :  { %v568_v57 = vadd.f32 1.0, %v1541_v56  ;;  %v1543_v58 = vpop.eup %1542 }
 0x555   :  { %v506_v59 = vadd.f32 1.0, %v1543_v58 }
 0x556   :  { %1544 = vrcp.f32 %v568_v57  ;;  %v580_v4 = vand.u32 2147483648, %v568_v57  ;;  %vm574_vm4 = vweird.f32 %v568_v57  ;;  %v578_v5 = vand.u32 2147483647, %v568_v57 }
 0x557   :  { %1546 = vrcp.f32 %v506_v59  ;;  %v518_v14 = vand.u32 2147483648, %v506_v59  ;;  %vm512_vm8 = vweird.f32 %v506_v59  ;;  %v516_v15 = vand.u32 2147483647, %v506_v59 }
 0x558   :  { %v581_v8 = vor.u32 1.1754944e-38, %v580_v4  ;;  %vm579_vm6 = vcmp.eq.f32.partialorder %v578_v5, 8.507059e+37 }
 0x559   :  { %v519_v24 = vor.u32 1.1754944e-38, %v518_v14  ;;  %vm517_vm11 = vcmp.eq.f32.partialorder %v516_v15, 8.507059e+37 }
 0x55c   :  { %v1545_v60 = vpop.eup %1544 }
 0x55d   :  { %v570_v61 = vmul.f32 %v1545_v60, %v568_v57  ;;  %v1547_v63 = vpop.eup %1546  ;;  %vm575_vm3 = vweird.f32 %v1545_v60 }
 0x55e   :  { %v508_v1 = vmul.f32 %v1547_v63, %v506_v59  ;;  %vm576_vm5 = vmor %vm574_vm4, %vm575_vm3  ;;  %vm513_vm7 = vweird.f32 %v1547_v63 }
 0x55f   :  { %v571_v62 = vsub.f32 1.0, %v570_v61  ;;  %vm514_vm10 = vmor %vm512_vm8, %vm513_vm7 }
 0x560   :  { %v509_v3 = vsub.f32 1.0, %v508_v1 }
 0x561   :  { %v572_v0 = vmul.f32 %v1545_v60, %v571_v62 }
 0x562   :  { %v510_v7 = vmul.f32 %v1547_v63, %v509_v3 }
 0x563   :  { %v573_v2 = vadd.f32 %v1545_v60, %v572_v0 }
 0x564   :  { %v511_v13 = vadd.f32 %v1547_v63, %v510_v7 }
 0x565   :  { %v577_v6 = vsel %vm576_vm5, %v1545_v60, %v573_v2 }
 0x566   :  { %v582_v9 = vsel %vm579_vm6, %v581_v8, %v577_v6  ;;  %v515_v17 = vsel %vm514_vm10, %v1547_v63, %v511_v13 }
 0x567   :  { %v520_v26 = vsel %vm517_vm11, %v519_v24, %v515_v17  ;;  %v585_v30 = vmul.f32 %v582_v9, %v1857_v27 }
 0x568   :  { %v523_v35 = vmul.f32 %v520_v26, %v1861_v32 }
 0x5a5   :  { %v588_v10 = vpop.permute.xlu1 %587 }
 0x5a6   :  { %v590_v11 = vmul.f32 %v588_v10, %v582_v9 }
 0x5a8   :  { %592 = vrot.lane.b32.xlu0 %v590_v11, %s1634_s6 }
 0x5ad   :  { %v526_v25 = vpop.permute.xlu2 %525 }
 0x5ae   :  { %v528_v28 = vmul.f32 %v526_v25, %v520_v26 }
 0x5b0   :  { %530 = vrot.lane.b32.xlu1 %v528_v28, %s1634_s6 }
 0x61a   :  { %v593_v31 = vpop.permute.xlu0 %592 }
 0x61b   :  { %v1891_v34 = vadd.f32 %v593_v31, %v585_v30 }
 0x61d   :  { %1548 = vtanh.f32 %v1891_v34 }
 0x622   :  { %v531_v29 = vpop.permute.xlu1 %530 }
 0x623   :  { %v1549_v33 = vpop.eup %1548  ;;  %v1895_v36 = vadd.f32 %v531_v29, %v523_v35  ;;  %v813_v29 = vld [vmem:[#allocation3 + $0x6] sm:$0x3] }
 0x624   :  { %598 = vrot.lane.b32.xlu2 %v1549_v33, %s1633_s5 }
 0x625   :  { %1550 = vtanh.f32 %v1895_v36 }
 0x62b   :  { %v1551_v37 = vpop.eup %1550 }
 0x62c   :  { %536 = vrot.lane.b32.xlu0 %v1551_v37, %s1633_s5  ;;  %v751_v37 = vld [vmem:[#allocation2 + $0x8] sm:$0x3] }
 0x67e   :  { %v599_v38 = vpop.permute.xlu2 %598 }
 0x67f   :  { %v601_v27 = vmul.f32 %v599_v38, %v582_v9 }
 0x681   :  { %609 = vrot.lane.b32.xlu1 %v601_v27, %s1634_s6 }
 0x69e   :  { %v537_v40 = vpop.permute.xlu0 %536 }
 0x69f   :  { %v539_v41 = vmul.f32 %v537_v40, %v520_v26 }
 0x6a1   :  { %603 = vrot.lane.b32.xlu2 %v539_v41, %s1634_s6 }
 0x6f3   :  { %v610_v32 = vpop.permute.xlu1 %609 }
 0x6f4   :  { %613 = vst.msk [vmem:[#allocation5 + $0xa] sm:$0x3] %vm334_vm9, %v610_v32  ;;  %1468 = vmatmul.msk.f32.vlgmr.msrb.gmra.mxu3 %vm76_vm0, %v610_v32 }
 0x6f5   :  { %1235 = vmatpush.msrb.mxu3 %v1751_v18  ;;  %v677_v18 = vld [vmem:[#allocation3 + $0x8] sm:$0x3] }
 0x6f7   :  { %1236 = vmatpush.msrb.mxu3 %v1757_v19 }
 0x6f9   :  { %1237 = vmatpush.msrb.mxu3 %v1769_v21 }
 0x6fb   :  { %v604_v42 = vpop.permute.xlu2 %603  ;;  %1238 = vmatpush.msrb.mxu3 %v1783_v23  ;;  %v1305_v43 = vld [vmem:[#allocation5 + $0xa] sm:$0x3] }
 0x6fc   :  { %607 = vst.msk [vmem:[#allocation4 + $0x4] sm:$0x3] %vm334_vm9, %v604_v42  ;;  %1466 = vmatmul.msk.f32.vlgmr.msrb.gmra.mxu2 %vm76_vm0, %v604_v42 }
 0x6fd   :  { %1174 = vmatpush.msrb.mxu2 %v1729_v12  ;;  %1334 = vst [vmem:[#allocation1 + $0x21] ss:$4 sm:$0xff] %v1305_v43 }
 0x6ff   :  { %1175 = vmatpush.msrb.mxu2 %v1743_v16 }
 0x701   :  { %1176 = vmatpush.msrb.mxu2 %v1762_v20 }
 0x703   :  { %1177 = vmatpush.msrb.mxu2 %v1778_v22 }
 0x777   :  { %v697_v19 = vpop.f32.mrf.mxu3 }
 0x778   :  { %v700_v21 = vadd.f32 %v697_v19, %v677_v18 }
 0x77a   :  { %1552 = vtanh.f32 %v700_v21  ;;  %v1469_v12 = vmul.f32 -1.442695, %v700_v21 }
 0x77f   :  { %v635_v23 = vpop.f32.mrf.mxu2 }
 0x780   :  { %v1553_v45 = vpop.eup %1552  ;;  %v638_v46 = vadd.f32 %v635_v23, %v615_v44 }
 0x781   :  { %723 = vrot.lane.b32.xlu0 %v1553_v45, %s1633_s5 }
 0x782   :  { %1554 = vtanh.f32 %v638_v46  ;;  %v1467_v16 = vmul.f32 -1.442695, %v638_v46 }
 0x783   :  { %1556 = vpow2.f32 %v1469_v12 }
 0x784   :  { %1558 = vpow2.f32 %v1467_v16 }
 0x788   :  { %v1555_v39 = vpop.eup %1554 }
 0x789   :  { %661 = vrot.lane.b32.xlu1 %v1555_v39, %s1633_s5  ;;  %v1557_v20 = vpop.eup %1556 }
 0x78a   :  { %v704_v22 = vadd.f32 1.0, %v1557_v20  ;;  %v1559_v47 = vpop.eup %1558 }
 0x78b   :  { %v642_v48 = vadd.f32 1.0, %v1559_v47 }
 0x78c   :  { %1560 = vrcp.f32 %v704_v22  ;;  %v716_v57 = vand.u32 2147483648, %v704_v22  ;;  %vm710_vm13 = vweird.f32 %v704_v22  ;;  %v714_v58 = vand.u32 2147483647, %v704_v22 }
 0x78d   :  { %1562 = vrcp.f32 %v642_v48  ;;  %v654_v2 = vand.u32 2147483648, %v642_v48  ;;  %vm648_vm2 = vweird.f32 %v642_v48  ;;  %v652_v3 = vand.u32 2147483647, %v642_v48 }
 0x78e   :  { %v717_v61 = vor.u32 1.1754944e-38, %v716_v57  ;;  %vm715_vm15 = vcmp.eq.f32.partialorder %v714_v58, 8.507059e+37 }
 0x78f   :  { %v655_v5 = vor.u32 1.1754944e-38, %v654_v2  ;;  %vm653_vm4 = vcmp.eq.f32.partialorder %v652_v3, 8.507059e+37 }
 0x792   :  { %v1561_v49 = vpop.eup %1560 }
 0x793   :  { %v706_v50 = vmul.f32 %v1561_v49, %v704_v22  ;;  %v1563_v52 = vpop.eup %1562  ;;  %vm711_vm12 = vweird.f32 %v1561_v49 }
 0x794   :  { %v644_v54 = vmul.f32 %v1563_v52, %v642_v48  ;;  %vm712_vm14 = vmor %vm710_vm13, %vm711_vm12  ;;  %vm649_vm1 = vweird.f32 %v1563_v52 }
 0x795   :  { %v707_v51 = vsub.f32 1.0, %v706_v50  ;;  %vm650_vm3 = vmor %vm648_vm2, %vm649_vm1 }
 0x796   :  { %v645_v56 = vsub.f32 1.0, %v644_v54 }
 0x797   :  { %v708_v53 = vmul.f32 %v1561_v49, %v707_v51 }
 0x798   :  { %v646_v60 = vmul.f32 %v1563_v52, %v645_v56 }
 0x799   :  { %v709_v55 = vadd.f32 %v1561_v49, %v708_v53 }
 0x79a   :  { %v647_v1 = vadd.f32 %v1563_v52, %v646_v60 }
 0x79b   :  { %v713_v59 = vsel %vm712_vm14, %v1561_v49, %v709_v55 }
 0x79c   :  { %v718_v63 = vsel %vm715_vm15, %v717_v61, %v713_v59  ;;  %v651_v4 = vsel %vm650_vm3, %v1563_v52, %v647_v1 }
 0x79d   :  { %v656_v6 = vsel %vm653_vm4, %v655_v5, %v651_v4  ;;  %v721_v9 = vmul.f32 %v718_v63, %v1891_v34 }
 0x79e   :  { %v659_v14 = vmul.f32 %v656_v6, %v1895_v36 }
 0x7f3   :  { %v724_v62 = vpop.permute.xlu0 %723 }
 0x7f4   :  { %v726_v0 = vmul.f32 %v724_v62, %v718_v63 }
 0x7f6   :  { %728 = vrot.lane.b32.xlu2 %v726_v0, %s1634_s6 }
 0x7fb   :  { %v662_v7 = vpop.permute.xlu1 %661 }
 0x7fc   :  { %v664_v8 = vmul.f32 %v662_v7, %v656_v6 }
 0x7fe   :  { %666 = vrot.lane.b32.xlu0 %v664_v8, %s1634_s6 }
 0x850   :  { %v729_v10 = vpop.permute.xlu2 %728 }
 0x851   :  { %v1919_v11 = vadd.f32 %v729_v10, %v721_v9 }
 0x853   :  { %1564 = vtanh.f32 %v1919_v11 }
 0x859   :  { %v1565_v13 = vpop.eup %1564 }
 0x85a   :  { %734 = vrot.lane.b32.xlu1 %v1565_v13, %s1633_s5 }
 0x870   :  { %v667_v15 = vpop.permute.xlu0 %666 }
 0x871   :  { %v1924_v17 = vadd.f32 %v667_v15, %v659_v14 }
 0x873   :  { %1566 = vtanh.f32 %v1924_v17 }
 0x879   :  { %v1567_v24 = vpop.eup %1566 }
 0x87a   :  { %672 = vrot.lane.b32.xlu2 %v1567_v24, %s1633_s5 }
 0x8cc   :  { %v735_v25 = vpop.permute.xlu1 %734 }
 0x8cd   :  { %v737_v26 = vmul.f32 %v735_v25, %v718_v63 }
 0x8cf   :  { %745 = vrot.lane.b32.xlu0 %v737_v26, %s1634_s6 }
 0x8d4   :  { %v673_v28 = vpop.permute.xlu2 %672 }
 0x8d5   :  { %v675_v30 = vmul.f32 %v673_v28, %v656_v6  ;;  %v887_v28 = vld [vmem:[#allocation2 + $0xa] sm:$0x3] }
 0x8d7   :  { %739 = vrot.lane.b32.xlu1 %v675_v30, %s1634_s6 }
 0x941   :  { %v746_v31 = vpop.permute.xlu0 %745 }
 0x942   :  { %749 = vst.msk [vmem:[#allocation5 + $0x8] sm:$0x3] %vm334_vm9, %v746_v31  ;;  %1472 = vmatmul.msk.f32.vlgmr.msra.gmra.mxu1 %vm76_vm0, %v746_v31 }
 0x949   :  { %v740_v34 = vpop.permute.xlu1 %739  ;;  %v1304_v35 = vld [vmem:[#allocation5 + $0x8] sm:$0x3] }
 0x94a   :  { %743 = vst.msk [vmem:[#allocation4 + $0x6] sm:$0x3] %vm334_vm9, %v740_v34  ;;  %1470 = vmatmul.msk.f32.vlgmr.msra.gmra.mxu0 %vm76_vm0, %v740_v34 }
 0x94b   :  { %1332 = vst [vmem:[#allocation1 + $0x20] ss:$4 sm:$0xff] %v1304_v35 }
 0x952   :  { %v1954_v15 = vld.sshfl [vmem:[#allocation1 + $0x20] sm:$0xff pattern:$0x73625140] }
 0x9bf   :  { %v833_v33 = vpop.f32.mrf.mxu1 }
 0x9c0   :  { %v836_v36 = vadd.f32 %v833_v33, %v813_v29 }
 0x9c2   :  { %1568 = vtanh.f32 %v836_v36  ;;  %v1473_v32 = vmul.f32 -1.442695, %v836_v36 }
 0x9c7   :  { %v771_v38 = vpop.f32.mrf.mxu0 }
 0x9c8   :  { %v1569_v27 = vpop.eup %1568  ;;  %v774_v40 = vadd.f32 %v771_v38, %v751_v37 }
 0x9c9   :  { %859 = vrot.lane.b32.xlu2 %v1569_v27, %s1633_s5 }
 0x9ca   :  { %1570 = vtanh.f32 %v774_v40  ;;  %v1471_v44 = vmul.f32 -1.442695, %v774_v40 }
 0x9cb   :  { %1572 = vpow2.f32 %v1473_v32 }
 0x9d0   :  { %v1571_v41 = vpop.eup %1570 }
 0x9d1   :  { %797 = vrot.lane.b32.xlu0 %v1571_v41, %s1633_s5  ;;  %v1573_v42 = vpop.eup %1572 }
 0x9d2   :  { %v840_v43 = vadd.f32 1.0, %v1573_v42 }
 0x9d4   :  { %1574 = vrcp.f32 %v840_v43  ;;  %v852_v46 = vand.u32 2147483648, %v840_v43  ;;  %vm846_vm6 = vweird.f32 %v840_v43  ;;  %v850_v39 = vand.u32 2147483647, %v840_v43 }
 0x9d5   :  { %1576 = vpow2.f32 %v1471_v44 }
 0x9d6   :  { %v853_v20 = vor.u32 1.1754944e-38, %v852_v46  ;;  %vm851_vm8 = vcmp.eq.f32.partialorder %v850_v39, 8.507059e+37 }
 0x9da   :  { %v1575_v18 = vpop.eup %1574 }
 0x9db   :  { %v842_v19 = vmul.f32 %v1575_v18, %v840_v43  ;;  %vm847_vm5 = vweird.f32 %v1575_v18  ;;  %v1577_v12 = vpop.eup %1576 }
 0x9dc   :  { %vm848_vm7 = vmor %vm846_vm6, %vm847_vm5  ;;  %v778_v22 = vadd.f32 1.0, %v1577_v12 }
 0x9dd   :  { %v843_v21 = vsub.f32 1.0, %v842_v19 }
 0x9de   :  { %1578 = vrcp.f32 %v778_v22  ;;  %v790_v55 = vand.u32 2147483648, %v778_v22  ;;  %vm784_vm11 = vweird.f32 %v778_v22  ;;  %v788_v56 = vand.u32 2147483647, %v778_v22 }
 0x9df   :  { %v844_v23 = vmul.f32 %v1575_v18, %v843_v21 }
 0x9e0   :  { %v791_v58 = vor.u32 1.1754944e-38, %v790_v55  ;;  %vm789_vm13 = vcmp.eq.f32.partialorder %v788_v56, 8.507059e+37 }
 0x9e1   :  { %v845_v45 = vadd.f32 %v1575_v18, %v844_v23 }
 0x9e3   :  { %v849_v16 = vsel %vm848_vm7, %v1575_v18, %v845_v45 }
 0x9e4   :  { %v854_v48 = vsel %vm851_vm8, %v853_v20, %v849_v16  ;;  %v1579_v50 = vpop.eup %1578 }
 0x9e5   :  { %v780_v51 = vmul.f32 %v1579_v50, %v778_v22  ;;  %vm785_vm10 = vweird.f32 %v1579_v50  ;;  %v857_v62 = vmul.f32 %v854_v48, %v1919_v11 }
 0x9e6   :  { %vm786_vm12 = vmor %vm784_vm11, %vm785_vm10 }
 0x9e7   :  { %v781_v52 = vsub.f32 1.0, %v780_v51 }
 0x9e9   :  { %v782_v53 = vmul.f32 %v1579_v50, %v781_v52 }
 0x9eb   :  { %v783_v54 = vadd.f32 %v1579_v50, %v782_v53 }
 0x9ed   :  { %v787_v57 = vsel %vm786_vm12, %v1579_v50, %v783_v54 }
 0x9ee   :  { %v792_v60 = vsel %vm789_vm13, %v791_v58, %v787_v57 }
 0x9ef   :  { %v795_v1 = vmul.f32 %v792_v60, %v1924_v17  ;;  %v949_v17 = vld [vmem:[#allocation3 + $0x4] sm:$0x3] }
 0xa23   :  { %v860_v47 = vpop.permute.xlu2 %859 }
 0xa24   :  { %v862_v49 = vmul.f32 %v860_v47, %v854_v48 }
 0xa26   :  { %864 = vrot.lane.b32.xlu1 %v862_v49, %s1634_s6 }
 0xa43   :  { %v798_v59 = vpop.permute.xlu0 %797 }
 0xa44   :  { %v800_v61 = vmul.f32 %v798_v59, %v792_v60 }
 0xa46   :  { %802 = vrot.lane.b32.xlu2 %v800_v61, %s1634_s6 }
 0xa98   :  { %v865_v63 = vpop.permute.xlu1 %864 }
 0xa99   :  { %v1939_v0 = vadd.f32 %v865_v63, %v857_v62 }
 0xa9b   :  { %1580 = vtanh.f32 %v1939_v0 }
 0xaa0   :  { %v803_v2 = vpop.permute.xlu2 %802 }
 0xaa1   :  { %v1581_v3 = vpop.eup %1580  ;;  %v1943_v4 = vadd.f32 %v803_v2, %v795_v1 }
 0xaa2   :  { %870 = vrot.lane.b32.xlu0 %v1581_v3, %s1633_s5 }
 0xaa3   :  { %1582 = vtanh.f32 %v1943_v4 }
 0xaa9   :  { %v1583_v5 = vpop.eup %1582 }
 0xaaa   :  { %808 = vrot.lane.b32.xlu1 %v1583_v5, %s1633_s5  ;;  %v1085_v5 = vld [vmem:[#allocation3 + $0x2] sm:$0x3] }
 0xb14   :  { %v871_v6 = vpop.permute.xlu0 %870 }
 0xb15   :  { %v873_v7 = vmul.f32 %v871_v6, %v854_v48 }
 0xb17   :  { %881 = vrot.lane.b32.xlu2 %v873_v7, %s1634_s6 }
 0xb1c   :  { %v809_v8 = vpop.permute.xlu1 %808 }
 0xb1d   :  { %v811_v9 = vmul.f32 %v809_v8, %v792_v60  ;;  %v1023_v8 = vld [vmem:[#allocation2 + $0xc] sm:$0x3] }
 0xb1f   :  { %875 = vrot.lane.b32.xlu0 %v811_v9, %s1634_s6 }
 0xb71   :  { %v882_v10 = vpop.permute.xlu2 %881 }
 0xb72   :  { %885 = vst.msk [vmem:[#allocation5 + $0x6] sm:$0x3] %vm334_vm9, %v882_v10  ;;  %1476 = vmatmul.msk.f32.vlgmr.msra.gmra.mxu3 %vm76_vm0, %v882_v10 }
 0xb79   :  { %v1303_v11 = vld [vmem:[#allocation5 + $0x6] sm:$0x3] }
 0xb7a   :  { %1330 = vst [vmem:[#allocation1 + $0x3] ss:$4 sm:$0xff] %v1303_v11 }
 0xb91   :  { %v876_v13 = vpop.permute.xlu0 %875 }
 0xb92   :  { %879 = vst.msk [vmem:[#allocation4 + $0x8] sm:$0x3] %vm334_vm9, %v876_v13  ;;  %1474 = vmatmul.msk.f32.vlgmr.msra.gmra.mxu2 %vm76_vm0, %v876_v13 }
 0xb99   :  { %v1296_v14 = vld [vmem:[#allocation4 + $0x8] sm:$0x3] }
 0xb9a   :  { %1384 = vst [vmem:[#allocation1 + $0x20] ss:$4 sm:$0xff] %v1296_v14 }
 0xbf5   :  { %v969_v24 = vpop.f32.mrf.mxu3 }
 0xbf6   :  { %v972_v25 = vadd.f32 %v969_v24, %v949_v17 }
 0xbf8   :  { %1584 = vtanh.f32 %v972_v25  ;;  %v1477_v35 = vmul.f32 -1.442695, %v972_v25 }
 0xbfe   :  { %v1585_v26 = vpop.eup %1584 }
 0xbff   :  { %995 = vrot.lane.b32.xlu1 %v1585_v26, %s1633_s5 }
 0xc15   :  { %v907_v30 = vpop.f32.mrf.mxu2 }
 0xc16   :  { %v910_v31 = vadd.f32 %v907_v30, %v887_v28 }
 0xc18   :  { %1586 = vtanh.f32 %v910_v31  ;;  %v1475_v29 = vmul.f32 -1.442695, %v910_v31 }
 0xc19   :  { %1588 = vpow2.f32 %v1477_v35 }
 0xc1a   :  { %1590 = vpow2.f32 %v1475_v29 }
 0xc1e   :  { %v1587_v34 = vpop.eup %1586 }
 0xc1f   :  { %933 = vrot.lane.b32.xlu2 %v1587_v34, %s1633_s5  ;;  %v1589_v33 = vpop.eup %1588 }
 0xc20   :  { %v976_v36 = vadd.f32 1.0, %v1589_v33  ;;  %v1591_v37 = vpop.eup %1590 }
 0xc21   :  { %v914_v38 = vadd.f32 1.0, %v1591_v37 }
 0xc22   :  { %1592 = vrcp.f32 %v976_v36  ;;  %v988_v21 = vand.u32 2147483648, %v976_v36  ;;  %vm982_vm15 = vweird.f32 %v976_v36  ;;  %v986_v44 = vand.u32 2147483647, %v976_v36 }
 0xc23   :  { %1594 = vrcp.f32 %v914_v38  ;;  %v926_v22 = vand.u32 2147483648, %v914_v38  ;;  %vm920_vm4 = vweird.f32 %v914_v38  ;;  %v924_v47 = vand.u32 2147483647, %v914_v38 }
 0xc24   :  { %v989_v46 = vor.u32 1.1754944e-38, %v988_v21  ;;  %vm987_vm2 = vcmp.eq.f32.partialorder %v986_v44, 8.507059e+37 }
 0xc25   :  { %v927_v49 = vor.u32 1.1754944e-38, %v926_v22  ;;  %vm925_vm6 = vcmp.eq.f32.partialorder %v924_v47, 8.507059e+37 }
 0xc28   :  { %v1593_v27 = vpop.eup %1592 }
 0xc29   :  { %v978_v40 = vmul.f32 %v1593_v27, %v976_v36  ;;  %v1595_v32 = vpop.eup %1594  ;;  %vm983_vm14 = vweird.f32 %v1593_v27 }
 0xc2a   :  { %v916_v43 = vmul.f32 %v1595_v32, %v914_v38  ;;  %vm984_vm1 = vmor %vm982_vm15, %vm983_vm14  ;;  %vm921_vm3 = vweird.f32 %v1595_v32 }
 0xc2b   :  { %v979_v41 = vsub.f32 1.0, %v978_v40  ;;  %vm922_vm5 = vmor %vm920_vm4, %vm921_vm3 }
 0xc2c   :  { %v917_v19 = vsub.f32 1.0, %v916_v43 }
 0xc2d   :  { %v980_v42 = vmul.f32 %v1593_v27, %v979_v41 }
 0xc2e   :  { %v918_v45 = vmul.f32 %v1595_v32, %v917_v19 }
 0xc2f   :  { %v981_v18 = vadd.f32 %v1593_v27, %v980_v42 }
 0xc30   :  { %v919_v20 = vadd.f32 %v1595_v32, %v918_v45 }
 0xc31   :  { %v985_v23 = vsel %vm984_vm1, %v1593_v27, %v981_v18 }
 0xc32   :  { %v990_v39 = vsel %vm987_vm2, %v989_v46, %v985_v23  ;;  %v923_v48 = vsel %vm922_vm5, %v1595_v32, %v919_v20 }
 0xc33   :  { %v928_v51 = vsel %vm925_vm6, %v927_v49, %v923_v48  ;;  %v993_v53 = vmul.f32 %v990_v39, %v1939_v0 }
 0xc34   :  { %v931_v56 = vmul.f32 %v928_v51, %v1943_v4 }
 0xc71   :  { %v996_v12 = vpop.permute.xlu1 %995 }
 0xc72   :  { %v998_v16 = vmul.f32 %v996_v12, %v990_v39 }
 0xc74   :  { %1000 = vrot.lane.b32.xlu0 %v998_v16, %s1634_s6 }
 0xc79   :  { %v934_v50 = vpop.permute.xlu2 %933 }
 0xc7a   :  { %v936_v52 = vmul.f32 %v934_v50, %v928_v51 }
 0xc7c   :  { %938 = vrot.lane.b32.xlu1 %v936_v52, %s1634_s6 }
 0xce6   :  { %v1001_v54 = vpop.permute.xlu0 %1000 }
 0xce7   :  { %v1961_v55 = vadd.f32 %v1001_v54, %v993_v53 }
 0xce9   :  { %1596 = vtanh.f32 %v1961_v55 }
 0xcee   :  { %v939_v57 = vpop.permute.xlu1 %938 }
 0xcef   :  { %v1597_v58 = vpop.eup %1596  ;;  %v1965_v59 = vadd.f32 %v939_v57, %v931_v56 }
 0xcf0   :  { %1006 = vrot.lane.b32.xlu2 %v1597_v58, %s1633_s5 }
 0xcf1   :  { %1598 = vtanh.f32 %v1965_v59 }
 0xcf7   :  { %v1599_v60 = vpop.eup %1598 }
 0xcf8   :  { %944 = vrot.lane.b32.xlu0 %v1599_v60, %s1633_s5  ;;  %v1220_v60 = vld [vmem:[#allocation3] sm:$0x3] }
 0xd4a   :  { %v1007_v61 = vpop.permute.xlu2 %1006 }
 0xd4b   :  { %v1009_v62 = vmul.f32 %v1007_v61, %v990_v39 }
 0xd4d   :  { %1017 = vrot.lane.b32.xlu1 %v1009_v62, %s1634_s6 }
 0xd6a   :  { %v945_v63 = vpop.permute.xlu0 %944 }
 0xd6b   :  { %v947_v0 = vmul.f32 %v945_v63, %v928_v51  ;;  %v1159_v63 = vld [vmem:[#allocation2 + $0xe] sm:$0x3] }
 0xd6d   :  { %1011 = vrot.lane.b32.xlu2 %v947_v0, %s1634_s6 }
 0xdbf   :  { %v1018_v1 = vpop.permute.xlu1 %1017 }
 0xdc0   :  { %1021 = vst.msk [vmem:[#allocation5 + $0x4] sm:$0x3] %vm334_vm9, %v1018_v1  ;;  %1480 = vmatmul.msk.f32.vlgmr.msrb.gmra.mxu1 %vm76_vm0, %v1018_v1 }
 0xdc7   :  { %v1012_v2 = vpop.permute.xlu2 %1011  ;;  %v1302_v3 = vld [vmem:[#allocation5 + $0x4] sm:$0x3] }
 0xdc8   :  { %1015 = vst.msk [vmem:[#allocation4 + $0xa] sm:$0x3] %vm334_vm9, %v1012_v2  ;;  %1478 = vmatmul.msk.f32.vlgmr.msrb.gmra.mxu0 %vm76_vm0, %v1012_v2 }
 0xdc9   :  { %1328 = vst [vmem:[#allocation1 + $0x2] ss:$4 sm:$0xff] %v1302_v3 }
 0xdcf   :  { %v1297_v4 = vld [vmem:[#allocation4 + $0xa] sm:$0x3] }
 0xdd0   :  { %1386 = vst [vmem:[#allocation1 + $0x21] ss:$4 sm:$0xff] %v1297_v4 }
 0xe3d   :  { %v1105_v6 = vpop.f32.mrf.mxu1 }
 0xe3e   :  { %v1108_v7 = vadd.f32 %v1105_v6, %v1085_v5 }
 0xe40   :  { %1600 = vtanh.f32 %v1108_v7  ;;  %v1481_v14 = vmul.f32 -1.442695, %v1108_v7 }
 0xe45   :  { %v1043_v9 = vpop.f32.mrf.mxu0 }
 0xe46   :  { %v1601_v10 = vpop.eup %1600  ;;  %v1046_v11 = vadd.f32 %v1043_v9, %v1023_v8 }
 0xe47   :  { %1131 = vrot.lane.b32.xlu0 %v1601_v10, %s1633_s5 }
 0xe48   :  { %1602 = vtanh.f32 %v1046_v11  ;;  %v1479_v17 = vmul.f32 -1.442695, %v1046_v11 }
 0xe49   :  { %1604 = vpow2.f32 %v1481_v14 }
 0xe4a   :  { %1606 = vpow2.f32 %v1479_v17 }
 0xe4e   :  { %v1603_v13 = vpop.eup %1602 }
 0xe4f   :  { %1069 = vrot.lane.b32.xlu1 %v1603_v13, %s1633_s5  ;;  %v1605_v24 = vpop.eup %1604 }
 0xe50   :  { %v1112_v25 = vadd.f32 1.0, %v1605_v24  ;;  %v1607_v26 = vpop.eup %1606 }
 0xe51   :  { %v1050_v28 = vadd.f32 1.0, %v1607_v26 }
 0xe52   :  { %1608 = vrcp.f32 %v1112_v25  ;;  %v1124_v38 = vand.u32 2147483648, %v1112_v25  ;;  %vm1118_vm8 = vweird.f32 %v1112_v25  ;;  %v1122_v27 = vand.u32 2147483647, %v1112_v25 }
 0xe53   :  { %1610 = vrcp.f32 %v1050_v28  ;;  %v1062_v21 = vand.u32 2147483648, %v1050_v28  ;;  %vm1056_vm13 = vweird.f32 %v1050_v28  ;;  %v1060_v44 = vand.u32 2147483647, %v1050_v28 }
 0xe54   :  { %v1125_v32 = vor.u32 1.1754944e-38, %v1124_v38  ;;  %vm1123_vm11 = vcmp.eq.f32.partialorder %v1122_v27, 8.507059e+37 }
 0xe55   :  { %v1063_v45 = vor.u32 1.1754944e-38, %v1062_v21  ;;  %vm1061_vm15 = vcmp.eq.f32.partialorder %v1060_v44, 8.507059e+37 }
 0xe58   :  { %v1609_v30 = vpop.eup %1608 }
 0xe59   :  { %v1114_v31 = vmul.f32 %v1609_v30, %v1112_v25  ;;  %v1611_v35 = vpop.eup %1610  ;;  %vm1119_vm7 = vweird.f32 %v1609_v30 }
 0xe5a   :  { %v1052_v33 = vmul.f32 %v1611_v35, %v1050_v28  ;;  %vm1120_vm10 = vmor %vm1118_vm8, %vm1119_vm7  ;;  %vm1057_vm12 = vweird.f32 %v1611_v35 }
 0xe5b   :  { %v1115_v34 = vsub.f32 1.0, %v1114_v31  ;;  %vm1058_vm14 = vmor %vm1056_vm13, %vm1057_vm12 }
 0xe5c   :  { %v1053_v37 = vsub.f32 1.0, %v1052_v33 }
 0xe5d   :  { %v1116_v29 = vmul.f32 %v1609_v30, %v1115_v34 }
 0xe5e   :  { %v1054_v41 = vmul.f32 %v1611_v35, %v1053_v37 }
 0xe5f   :  { %v1117_v36 = vadd.f32 %v1609_v30, %v1116_v29 }
 0xe60   :  { %v1055_v19 = vadd.f32 %v1611_v35, %v1054_v41 }
 0xe61   :  { %v1121_v40 = vsel %vm1120_vm10, %v1609_v30, %v1117_v36 }
 0xe62   :  { %v1126_v43 = vsel %vm1123_vm11, %v1125_v32, %v1121_v40  ;;  %v1059_v23 = vsel %vm1058_vm14, %v1611_v35, %v1055_v19 }
 0xe63   :  { %v1064_v46 = vsel %vm1061_vm15, %v1063_v45, %v1059_v23  ;;  %v1129_v16 = vmul.f32 %v1126_v43, %v1961_v55 }
 0xe64   :  { %v1067_v48 = vmul.f32 %v1064_v46, %v1965_v59 }
 0xeb9   :  { %v1132_v42 = vpop.permute.xlu0 %1131 }
 0xeba   :  { %v1134_v18 = vmul.f32 %v1132_v42, %v1126_v43 }
 0xebc   :  { %1136 = vrot.lane.b32.xlu2 %v1134_v18, %s1634_s6 }
 0xec1   :  { %v1070_v39 = vpop.permute.xlu1 %1069 }
 0xec2   :  { %v1072_v12 = vmul.f32 %v1070_v39, %v1064_v46 }
 0xec4   :  { %1074 = vrot.lane.b32.xlu0 %v1072_v12, %s1634_s6 }
 0xf16   :  { %v1137_v20 = vpop.permute.xlu2 %1136 }
 0xf17   :  { %v1981_v22 = vadd.f32 %v1137_v20, %v1129_v16 }
 0xf19   :  { %1612 = vtanh.f32 %v1981_v22 }
 0xf1f   :  { %v1613_v47 = vpop.eup %1612 }
 0xf20   :  { %1142 = vrot.lane.b32.xlu1 %v1613_v47, %s1633_s5  ;;  %v1315_v47 = vld [vmem:[%s2071_s8 + $0x18] sm:$0xff] }
 0xf21   :  { %1357 = vmatpush.msra.mxu0 %v1315_v47 }
 0xf36   :  { %v1075_v49 = vpop.permute.xlu0 %1074 }
 0xf37   :  { %v1986_v50 = vadd.f32 %v1075_v49, %v1067_v48  ;;  %v1314_v48 = vld [vmem:[%s2071_s8 + $0x10] sm:$0xff]  ;;  %v1313_v49 = vld [vmem:[%s2071_s8 + $0x8] sm:$0xff] }
 0xf38   :  { %1358 = vmatpush.msra.mxu0 %v1314_v48 }
 0xf39   :  { %1614 = vtanh.f32 %v1986_v50 }
 0xf3a   :  { %1359 = vmatpush.msra.mxu0 %v1313_v49 }
 0xf3f   :  { %v1615_v51 = vpop.eup %1614 }
 0xf40   :  { %1080 = vrot.lane.b32.xlu2 %v1615_v51, %s1633_s5  ;;  %v1311_v51 = vld [vmem:[%s2072_s7 + $0x18] sm:$0xff] }
 0xf41   :  { %1409 = vmatpush.msra.mxu1 %v1311_v51 }
 0xf92   :  { %v1143_v52 = vpop.permute.xlu1 %1142 }
 0xf93   :  { %v1145_v53 = vmul.f32 %v1143_v52, %v1126_v43  ;;  %v1310_v52 = vld [vmem:[%s2072_s7 + $0x10] sm:$0xff] }
 0xf94   :  { %1410 = vmatpush.msra.mxu1 %v1310_v52 }
 0xf95   :  { %1153 = vrot.lane.b32.xlu0 %v1145_v53, %s1634_s6  ;;  %v1309_v53 = vld [vmem:[%s2072_s7 + $0x8] sm:$0xff] }
 0xf96   :  { %1411 = vmatpush.msra.mxu1 %v1309_v53 }
 0xf9a   :  { %v1081_v54 = vpop.permute.xlu2 %1080 }
 0xf9b   :  { %v1083_v55 = vmul.f32 %v1081_v54, %v1064_v46  ;;  %v1308_v54 = vld [vmem:[%s2072_s7] sm:$0xff] }
 0xf9c   :  { %1412 = vmatpush.msra.mxu1 %v1308_v54 }
 0xf9d   :  { %1147 = vrot.lane.b32.xlu1 %v1083_v55, %s1634_s6 }
0x1007   :  { %v1154_v56 = vpop.permute.xlu0 %1153 }
0x1008   :  { %1157 = vst.msk [vmem:[#allocation5 + $0x2] sm:$0x3] %vm334_vm9, %v1154_v56  ;;  %1484 = vmatmul.msk.f32.vlgmr.msrb.gmra.mxu3 %vm76_vm0, %v1154_v56 }
0x100f   :  { %v1148_v57 = vpop.permute.xlu1 %1147  ;;  %v1301_v58 = vld [vmem:[#allocation5 + $0x2] sm:$0x3] }
0x1010   :  { %1151 = vst.msk [vmem:[#allocation4 + $0xc] sm:$0x3] %vm334_vm9, %v1148_v57  ;;  %1482 = vmatmul.msk.f32.vlgmr.msrb.gmra.mxu2 %vm76_vm0, %v1148_v57  ;;  %v1292_v57 = vld [vmem:[#allocation4] sm:$0x3] }
0x1011   :  { %1326 = vst [vmem:[#allocation1 + $0x1] ss:$4 sm:$0xff] %v1301_v58 }
0x1017   :  { %v1298_v59 = vld [vmem:[#allocation4 + $0xc] sm:$0x3] }
0x1018   :  { %1388 = vst [vmem:[#allocation1 + $0x22] ss:$4 sm:$0xff] %v1298_v59  ;;  %v1293_v59 = vld [vmem:[#allocation4 + $0x2] sm:$0x3] }
0x108b   :  { %v1240_v61 = vpop.f32.mrf.mxu3 }
0x108c   :  { %v1243_v62 = vadd.f32 %v1240_v61, %v1220_v60  ;;  %v1294_v60 = vld [vmem:[#allocation4 + $0x4] sm:$0x3]  ;;  %v1295_v61 = vld [vmem:[#allocation4 + $0x6] sm:$0x3] }
0x108e   :  { %1616 = vtanh.f32 %v1243_v62  ;;  %v1485_v4 = vmul.f32 -1.442695, %v1243_v62 }
0x1093   :  { %v1179_v0 = vpop.f32.mrf.mxu2 }
0x1094   :  { %v1617_v1 = vpop.eup %1616  ;;  %v1182_v2 = vadd.f32 %v1179_v0, %v1159_v63 }
0x1095   :  { %1266 = vrot.lane.b32.xlu2 %v1617_v1, %s1633_s5 }
0x1096   :  { %1618 = vtanh.f32 %v1182_v2  ;;  %v1483_v10 = vmul.f32 -1.442695, %v1182_v2  ;;  %v1503_v2 = vld [vmem:[%s2073_s9] ss:$0 sm:$0xff] }
0x1097   :  { %1620 = vpow2.f32 %v1485_v4 }
0x109c   :  { %v1619_v3 = vpop.eup %1618 }
0x109d   :  { %1205 = vrot.lane.b32.xlu0 %v1619_v3, %s1633_s5  ;;  %v1621_v5 = vpop.eup %1620 }
0x109e   :  { %v1247_v6 = vadd.f32 1.0, %v1621_v5 }
0x10a0   :  { %1622 = vrcp.f32 %v1247_v6  ;;  %v1259_v14 = vand.u32 2147483648, %v1247_v6  ;;  %vm1253_vm2 = vweird.f32 %v1247_v6  ;;  %v1257_v17 = vand.u32 2147483647, %v1247_v6 }
0x10a1   :  { %1624 = vpow2.f32 %v1483_v10 }
0x10a2   :  { %v1260_v26 = vor.u32 1.1754944e-38, %v1259_v14  ;;  %vm1258_vm4 = vcmp.eq.f32.partialorder %v1257_v17, 8.507059e+37 }
0x10a6   :  { %v1623_v7 = vpop.eup %1622 }
0x10a7   :  { %v1249_v8 = vmul.f32 %v1623_v7, %v1247_v6  ;;  %vm1254_vm1 = vweird.f32 %v1623_v7  ;;  %v1625_v24 = vpop.eup %1624 }
0x10a8   :  { %vm1255_vm3 = vmor %vm1253_vm2, %vm1254_vm1  ;;  %v1186_v28 = vadd.f32 1.0, %v1625_v24 }
0x10a9   :  { %v1250_v9 = vsub.f32 1.0, %v1249_v8 }
0x10aa   :  { %1626 = vrcp.f32 %v1186_v28  ;;  %v1198_v38 = vand.u32 2147483648, %v1186_v28  ;;  %vm1192_vm6 = vweird.f32 %v1186_v28  ;;  %v1196_v27 = vand.u32 2147483647, %v1186_v28 }
0x10ab   :  { %v1251_v11 = vmul.f32 %v1623_v7, %v1250_v9 }
0x10ac   :  { %v1199_v41 = vor.u32 1.1754944e-38, %v1198_v38  ;;  %vm1197_vm8 = vcmp.eq.f32.partialorder %v1196_v27, 8.507059e+37 }
0x10ad   :  { %v1252_v13 = vadd.f32 %v1623_v7, %v1251_v11 }
0x10af   :  { %v1256_v25 = vsel %vm1255_vm3, %v1623_v7, %v1252_v13 }
0x10b0   :  { %v1261_v31 = vsel %vm1258_vm4, %v1260_v26, %v1256_v25  ;;  %v1627_v35 = vpop.eup %1626 }
0x10b1   :  { %v1188_v29 = vmul.f32 %v1627_v35, %v1186_v28  ;;  %vm1193_vm5 = vweird.f32 %v1627_v35  ;;  %v1264_v18 = vmul.f32 %v1261_v31, %v1981_v22 }
0x10b2   :  { %vm1194_vm7 = vmor %vm1192_vm6, %vm1193_vm5 }
0x10b3   :  { %v1189_v33 = vsub.f32 1.0, %v1188_v29 }
0x10b5   :  { %v1190_v36 = vmul.f32 %v1627_v35, %v1189_v33 }
0x10b7   :  { %v1191_v37 = vadd.f32 %v1627_v35, %v1190_v36 }
0x10b9   :  { %v1195_v40 = vsel %vm1194_vm7, %v1627_v35, %v1191_v37 }
0x10ba   :  { %v1200_v42 = vsel %vm1197_vm8, %v1199_v41, %v1195_v40 }
0x10bb   :  { %v1203_v44 = vmul.f32 %v1200_v42, %v1986_v50  ;;  %v1312_v50 = vld [vmem:[%s2071_s8] sm:$0xff] }
0x10bc   :  { %1360 = vmatpush.msra.mxu0 %v1312_v50 }
0x10ef   :  { %v1267_v30 = vpop.permute.xlu2 %1266 }
0x10f0   :  { %v1269_v34 = vmul.f32 %v1267_v30, %v1261_v31 }
0x10f2   :  { %1271 = vrot.lane.b32.xlu1 %v1269_v34, %s1634_s6 }
0x110f   :  { %v1206_v32 = vpop.permute.xlu0 %1205 }
0x1110   :  { %v1208_v43 = vmul.f32 %v1206_v32, %v1200_v42 }
0x1112   :  { %1210 = vrot.lane.b32.xlu2 %v1208_v43, %s1634_s6 }
0x1164   :  { %v1272_v19 = vpop.permute.xlu1 %1271 }
0x1165   :  { %v1274_v21 = vadd.f32 %v1272_v19, %v1264_v18 }
0x1167   :  { %1628 = vtanh.f32 %v1274_v21 }
0x116c   :  { %v1211_v23 = vpop.permute.xlu2 %1210 }
0x116d   :  { %v1629_v45 = vpop.eup %1628  ;;  %v1213_v46 = vadd.f32 %v1211_v23, %v1203_v44 }
0x116e   :  { %1277 = vrot.lane.b32.xlu0 %v1629_v45, %s1633_s5 }
0x116f   :  { %1630 = vtanh.f32 %v1213_v46 }
0x1175   :  { %v1631_v39 = vpop.eup %1630 }
0x1176   :  { %1216 = vrot.lane.b32.xlu1 %v1631_v39, %s1633_s5 }
0x11e0   :  { %v1278_v12 = vpop.permute.xlu0 %1277 }
0x11e1   :  { %v1280_v16 = vmul.f32 %v1278_v12, %v1261_v31 }
0x11e3   :  { %1288 = vrot.lane.b32.xlu2 %v1280_v16, %s1634_s6 }
0x11e8   :  { %v1217_v20 = vpop.permute.xlu1 %1216 }
0x11e9   :  { %v1219_v22 = vmul.f32 %v1217_v20, %v1200_v42 }
0x11eb   :  { %1282 = vrot.lane.b32.xlu0 %v1219_v22, %s1634_s6 }
0x123d   :  { %v1289_v55 = vpop.permute.xlu2 %1288 }
0x123e   :  { %1291 = vst.msk [vmem:[#allocation5] sm:$0x3] %vm334_vm9, %v1289_v55 }
0x1245   :  { %v1300_v56 = vld [vmem:[#allocation5] sm:$0x3] }
0x1246   :  { %1324 = vst [vmem:[#allocation1] ss:$4 sm:$0xff] %v1300_v56 }
0x124d   :  { %v1339_v58 = vld.sshfl [vmem:[#allocation1] sm:$0xff pattern:$0x73625140] }
0x124e   :  { %1486 = vmatmul.msk.f32.vlgmr.msra.gmra.mxu0 %vm76_vm0, %v1339_v58  ;;  %1376 = vst [vmem:[#allocation1] ss:$4 sm:$0xff] %v1292_v57 }
0x124f   :  { %1378 = vst [vmem:[#allocation1 + $0x1] ss:$4 sm:$0xff] %v1293_v59 }
0x1250   :  { %1380 = vst [vmem:[#allocation1 + $0x2] ss:$4 sm:$0xff] %v1294_v60 }
0x1251   :  { %1382 = vst [vmem:[#allocation1 + $0x3] ss:$4 sm:$0xff] %v1295_v61 }
0x1256   :  { %1487 = vmatmul.msk.f32.gmra.mxu0 %vm76_vm0, %v1954_v15 }
0x1258   :  { %v1391_v62 = vld.sshfl [vmem:[#allocation1] sm:$0xff pattern:$0x73625140] }
0x1259   :  { %1488 = vmatmul.msk.f32.vlgmr.msra.gmra.mxu1 %vm76_vm0, %v1391_v62 }
0x125d   :  { %v1283_v63 = vpop.permute.xlu0 %1282 }
0x125e   :  { %1286 = vst.msk [vmem:[#allocation4 + $0xe] sm:$0x3] %vm334_vm9, %v1283_v63 }
0x1265   :  { %v1299_v0 = vld [vmem:[#allocation4 + $0xe] sm:$0x3] }
0x1266   :  { %1390 = vst [vmem:[#allocation1 + $0x23] ss:$4 sm:$0xff] %v1299_v0 }
0x126d   :  { %v1392_v1 = vld.sshfl [vmem:[#allocation1 + $0x20] sm:$0xff pattern:$0x73625140] }
0x126e   :  { %1489 = vmatmul.msk.f32.gmra.mxu1 %vm76_vm0, %v1392_v1 }
0x12cb   :  { %v1362_v3 = vpop.f32.mrf.mxu0 }
0x12d3   :  { %v1365_v9 = vpop.f32.mrf.mxu0 }
0x12d6   :  { %v1414_v4 = vpop.f32.mrf.mxu1 }
0x12d7   :  { %v1415_v5 = vadd.f32 %v1414_v4, %v1362_v3 }
0x12d9   :  { %v1424_v6 = vadd.f32 %v1503_v2, %v1415_v5 }
0x12db   :  { %v1428_v15 = vrot.slane %v1424_v6, 2  ;;  %v1429_v7 = vrot.slane %v1424_v6, 4  ;;  %v1430_v8 = vrot.slane %v1424_v6, 6  ;;  %1440 = vst [vmem:[%s2074_s10] sm:$0x3] %v1424_v6 }
0x12dd   :  { %1441 = vst [vmem:[%s2074_s10 + $0x2] sm:$0x3] %v1428_v15 }
0x12de   :  { %1442 = vst [vmem:[%s2074_s10 + $0x4] sm:$0x3] %v1429_v7 }
0x12df   :  { %1443 = vst [vmem:[%s2074_s10 + $0x6] sm:$0x3] %v1430_v8 }
0x12eb   :  { %v1417_v10 = vpop.f32.mrf.mxu1 }
0x12ec   :  { %v1418_v11 = vadd.f32 %v1417_v10, %v1365_v9 }
0x12ee   :  { %v1425_v13 = vadd.f32 %v1503_v2, %v1418_v11 }
0x12f0   :  { %v1431_v14 = vrot.slane %v1425_v13, 2  ;;  %v1432_v17 = vrot.slane %v1425_v13, 4  ;;  %v1433_v24 = vrot.slane %v1425_v13, 6  ;;  %1444 = vst [vmem:[%s2074_s10 + $0x8] sm:$0x3] %v1425_v13 }
0x12f2   :  { %1445 = vst [vmem:[%s2074_s10 + $0xa] sm:$0x3] %v1431_v14 }
0x12f3   :  { %1446 = vst [vmem:[%s2074_s10 + $0xc] sm:$0x3] %v1432_v17 }
0x12f4   :  { %1447 = vst [vmem:[%s2074_s10 + $0xe] sm:$0x3] %v1433_v24 }

</bundles_post_ra>
